<compile_context>
chip_gen: v7x
topology: tpu7x:2x2x1
jax: 0.10.0
libtpu: 0.0.40
codegen_flags: <defaults>
</compile_context>

<pallas_src>
import functools
import math

import jax
import jax.numpy as jnp
from jax import lax
from jax.experimental import pallas as pl
from jax.experimental.pallas import tpu as pltpu


def _round_up(a, b):
    return (a + b - 1) // b * b


def scoreformer_kernel(
    # streamed row / neighbor tiles
    adj_ij_ref, bin_i_ref, bin_j_ref, x_i_ref, x_j_ref, gm_ref, wts_ref, rc_ref,
    # resident parameters (constant index maps)
    dngW_ref, dngb_ref, wlWf_ref, wlbf_ref, lng_ref, lnb_ref,
    attnW_ref, attnb_ref, f1W_ref, f1b_ref, f2W_ref, f2b_ref,
    n1g_ref, n1b_ref, n2g_ref, n2b_ref,
    preW_ref, preb_ref, outw_ref, outb_ref,
    # output
    out_ref,
    # scratch
    dng_acc,
    *, num_weights, num_layers, d_model, d_slice, mxu_dtype,
):
    f32 = jnp.float32
    j = pl.program_id(1)
    nj = pl.num_programs(1)

    def mm(a, b):
        return jnp.dot(a.astype(mxu_dtype), b.astype(mxu_dtype),
                       preferred_element_type=f32)

    # ---- init accumulator with the graph-structure term (gm * x) ------------
    @pl.when(j == 0)
    def _():
        dng_acc[...] = gm_ref[...].astype(f32) * x_i_ref[...].astype(f32)

    # ---- DNG accumulation over the neighbor (j) axis -------------------------
    # binarization hoisted: bin_i / bin_j arrive as bf16 0/1 slabs.
    inter = lax.dot_general(bin_i_ref[...], bin_j_ref[...],
                            dimension_numbers=(((1,), (1,)), ((), ())),
                            preferred_element_type=f32)          # [tm, tn]
    # faithful reproduction of the torch broadcast: rowsum_i + colsum_i - inter
    union = rc_ref[...] - inter
    sim = inter * pl.reciprocal(union + 1e-8, approx=True)       # EUP reciprocal
    # direct + neighborhood terms share the x_j contraction -> one MXU pass
    dng_acc[...] += mm(adj_ij_ref[...].astype(f32) + sim, x_j_ref[...])

    # ---- epilogue: per-row-tile network, only on the last neighbor step ------
    @pl.when(j == nj - 1)
    def _():
        D = d_model
        x_i = x_i_ref[...].astype(f32)

        dng = mm(dng_acc[...], dngW_ref[...]) + dngb_ref[...]            # [tm, D]

        # weighted input projection: one wide matmul (128-lane-aligned slices)
        proj = mm(x_i, wlWf_ref[...]) + wlbf_ref[...]                    # [tm, NW*Ds]
        wts = wts_ref[...].astype(f32)
        weighted = jnp.zeros((x_i.shape[0], d_slice), f32)
        for w in range(num_weights):
            weighted = weighted + proj[:, w * d_slice:(w + 1) * d_slice] * wts[:, w:w + 1]
        weighted_x = weighted if d_slice == D else weighted[:, :D]

        def layernorm(v, g, b, eps=1e-5):
            mu = jnp.mean(v, axis=-1, keepdims=True)
            var = jnp.mean((v - mu) ** 2, axis=-1, keepdims=True)
            return (v - mu) * lax.rsqrt(var + eps) * g + b

        h = layernorm(weighted_x, lng_ref[...], lnb_ref[...])

        # TransformerEncoder with seq_len == 1: softmax == 1, so attention is
        # out_proj(V); vW@oW and biases are pre-fused in the wrapper.
        # Per-layer ref reads keep only one layer's weights live at a time.
        # TODO(synk): switch to lax.fori_loop for large num_layers.
        for l in range(num_layers):
            attn = mm(h, attnW_ref[l]) + attnb_ref[l]
            h = layernorm(h + attn, n1g_ref[l], n1b_ref[l])               # norm1
            ff = jnp.maximum(mm(h, f1W_ref[l]) + f1b_ref[l], 0.0)         # relu
            ff = mm(ff, f2W_ref[l]) + f2b_ref[l]
            h = layernorm(h + ff, n2g_ref[l], n2b_ref[l])                 # norm2

        combined = h + dng                                 # dropout == identity (eval)
        pre = jnp.maximum(mm(combined, preW_ref[...]) + preb_ref[...], 0.0)

        # lane-dense head: contract outW row-vector against pre's feature axis
        # so the result lands directly as [1, tm] (tm on lanes, unmasked store).
        logit = lax.dot_general(outw_ref[...].astype(mxu_dtype),
                                pre.astype(mxu_dtype),
                                dimension_numbers=(((1,), (1,)), ((), ())),
                                preferred_element_type=f32)               # [1, tm]
        out_ref[...] = jax.nn.sigmoid(logit + outb_ref[...])


def init_params(key, input_dim, d_model, d_ff, num_layers, num_weights):
    keys = iter(jax.random.split(key, 32))

    def W(fan_in, fan_out, lead=()):
        bound = math.sqrt(6.0 / (fan_in + fan_out))          # xavier_uniform, gain=1
        return jax.random.uniform(next(keys), lead + (fan_in, fan_out),
                                  jnp.float32, -bound, bound)

    def B(fan_in, fan_out, lead=()):
        bound = 1.0 / math.sqrt(fan_in)                      # torch Linear bias init
        shape = lead + (fan_out,) if lead else (1, fan_out)
        return jax.random.uniform(next(keys), shape, jnp.float32, -bound, bound)

    L = num_layers
    return dict(
        dngW=W(input_dim, d_model), dngb=B(input_dim, d_model),
        wlW=W(input_dim, d_model, (num_weights,)), wlb=B(input_dim, d_model, (num_weights,)),
        lng=jnp.ones((1, d_model), jnp.float32), lnb=jnp.zeros((1, d_model), jnp.float32),
        vW=W(d_model, d_model, (L,)), vb=B(d_model, d_model, (L,)),
        oW=W(d_model, d_model, (L,)), ob=B(d_model, d_model, (L,)),
        f1W=W(d_model, d_ff, (L,)), f1b=B(d_model, d_ff, (L,)),
        f2W=W(d_ff, d_model, (L,)), f2b=B(d_ff, d_model, (L,)),
        n1g=jnp.ones((L, d_model), jnp.float32), n1b=jnp.zeros((L, d_model), jnp.float32),
        n2g=jnp.ones((L, d_model), jnp.float32), n2b=jnp.zeros((L, d_model), jnp.float32),
        preW=W(d_model, d_model), preb=B(d_model, d_model),
        outW=W(d_model, 1), outb=B(d_model, 1),
    )


def scoreformer_forward(params, x, adjacency_matrix, graph_metrics, weights,
                        *, num_weights, num_layers, mxu_dtype=jnp.bfloat16):
    f32 = jnp.float32
    x = x.astype(f32)
    adj = adjacency_matrix.astype(f32)
    wts = weights.astype(f32)
    N, D_in = x.shape
    d_model = params['dngW'].shape[1]
    d_ff = params['f1W'].shape[2]

    # project_graph_metrics: static tiling / truncation (glue, static shapes)
    M = graph_metrics.shape[1]
    gm = graph_metrics.astype(f32)
    if M < D_in:
        repeats = (D_in + M - 1) // M
        gm = jnp.tile(gm, (1, repeats))[:, :D_in]
    else:
        gm = gm[:, :D_in]

    # ---- generation-aware VMEM budget ----------------------------------------
    try:
        phys_vmem = int(getattr(pltpu.get_tpu_info(), "vmem_capacity_bytes",
                                64 * 1024 * 1024))
    except Exception:
        phys_vmem = 64 * 1024 * 1024          # most conservative (v7x)
    vmem_cap = (phys_vmem * 3) // 4           # leave headroom for Mosaic scratch
    slab_budget = (vmem_cap * 7) // 10

    # ---- row / neighbor tiling (pad N so tiles divide evenly) ----------------
    N_pad8 = _round_up(N, 8)
    if N_pad8 <= 128:
        tm = tn = N_pad = N_pad8              # single tile (small graphs)
    else:
        # bigger tm => higher arithmetic intensity on the dominant bin_j stream;
        # >=2 row tiles whenever N > 128 so both v7x TensorCores get work.
        tm = 512 if N > 2048 else (256 if N > 1024 else 128)
        # two bf16 (tile, N_pad) slabs, double-buffered, must fit the VMEM budget
        while tm > 128 and 8 * tm * _round_up(N, tm) > slab_budget:
            tm //= 2
        N_pad = _round_up(N, tm)
        tn = tm
    pad = N_pad - N
    if pad:
        x = jnp.pad(x, ((0, pad), (0, 0)))
        gm = jnp.pad(gm, ((0, pad), (0, 0)))
        wts = jnp.pad(wts, ((0, pad), (0, 0)))
        adj = jnp.pad(adj, ((0, pad), (0, pad)))

    # ---- hoisted binarization + global reductions (kernel never re-binarizes) -
    binary = (adj > 0).astype(f32)
    rc = (jnp.sum(binary, axis=1, keepdims=True)
          + jnp.sum(binary, axis=0, keepdims=True).T)           # [N_pad, 1]
    bin_bf = binary.astype(jnp.bfloat16)                         # exact for 0/1
    adj_stream = adj.astype(mxu_dtype)                           # raw direct-term values

    # ---- algebraic weight fusions (done once, outside the kernel) ------------
    # seq_len==1 attention: attn = h @ (vW @ oW) + (vb @ oW + ob)
    attnW = jnp.einsum('lij,ljk->lik', params['vW'], params['oW'])
    attnb = (jnp.einsum('li,lik->lk', params['vb'], params['oW'])
             + params['ob']).reshape(num_layers, 1, d_model)
    # num_weights projections -> one wide matmul; each per-weight slice is
    # padded to a 128-lane boundary so the in-kernel weighted sum is copy-free.
    D_slice = _round_up(d_model, 128)
    wlW_pad = jnp.pad(params['wlW'], ((0, 0), (0, 0), (0, D_slice - d_model)))
    wlb_pad = jnp.pad(params['wlb'], ((0, 0), (0, D_slice - d_model)))
    wlWf = jnp.transpose(wlW_pad, (1, 0, 2)).reshape(D_in, num_weights * D_slice)
    wlbf = wlb_pad.reshape(1, num_weights * D_slice)
    outw = params['outW'].T                 # [1, d_model]
    outb = params['outb'].reshape(1, 1)

    def as3(p):    # per-layer [L, feat] -> [L, 1, feat] for ref[l] reads
        return p.reshape(num_layers, 1, -1)

    mx = lambda a: a.astype(mxu_dtype)      # pre-cast matmul operands once
    weights_list = [
        mx(params['dngW']), params['dngb'], mx(wlWf), wlbf,
        params['lng'], params['lnb'],
        mx(attnW), attnb, mx(params['f1W']), as3(params['f1b']),
        mx(params['f2W']), as3(params['f2b']),
        as3(params['n1g']), as3(params['n1b']), as3(params['n2g']), as3(params['n2b']),
        mx(params['preW']), params['preb'], mx(outw), outb,
    ]
    streamed_inputs = (adj_stream, bin_bf, bin_bf, x, x, gm, wts, rc)

    # NOTE: bin_i slab has a constant-over-j index map (resident per i-tile);
    # default double buffering kept.  pipeline_mode=pl.Buffered(3) on bin_j is a
    # cheap sweep if the slab DMA is still exposed after the bf16 narrowing.
    streamed_specs = [
        pl.BlockSpec((tm, tn), lambda i, j: (i, j)),            # raw adj tile (direct term)
        pl.BlockSpec((tm, N_pad), lambda i, j: (i, 0)),         # binary rows, i tile
        pl.BlockSpec((tn, N_pad), lambda i, j: (j, 0)),         # binary rows, j tile
        pl.BlockSpec((tm, D_in), lambda i, j: (i, 0)),          # x_i
        pl.BlockSpec((tn, D_in), lambda i, j: (j, 0)),          # x_j
        pl.BlockSpec((tm, D_in), lambda i, j: (i, 0)),          # graph metrics
        pl.BlockSpec((tm, num_weights), lambda i, j: (i, 0)),   # weights
        pl.BlockSpec((tm, 1), lambda i, j: (i, 0)),             # rowsum + colsum
    ]
    weight_specs = [
        pl.BlockSpec(w.shape, lambda i, j, nd=w.ndim: (0,) * nd) for w in weights_list
    ]

    grid = (N_pad // tm, N_pad // tn)

    # advisory cost estimate (dominated by the two O(N^2)/O(N^3) graph contractions)
    flops = (2 * N_pad * N_pad * N_pad
             + 2 * N_pad * N_pad * D_in
             + 2 * N_pad * D_in * (d_model + num_weights * D_slice)
             + 2 * N_pad * num_layers * (d_model * d_model + 2 * d_model * d_ff)
             + 2 * N_pad * d_model * (d_model + 1))
    bpe = jnp.dtype(mxu_dtype).itemsize
    bytes_accessed = (2 * N_pad * N_pad * (1 + N_pad // tm)      # bf16 binary slabs
                      + bpe * N_pad * N_pad                      # raw adj tiles
                      + 4 * (4 * N_pad * D_in + N_pad * (num_weights + 2))
                      + sum(int(w.size) * w.dtype.itemsize for w in weights_list))
    cost = pl.CostEstimate(
        flops=int(flops),
        transcendentals=int(N_pad * N_pad + N_pad * (2 * num_layers + 2)),
        bytes_accessed=int(bytes_accessed))

    # scoped VMEM limit: estimate the real footprint, never exceed the physical cap
    est_vmem = int(
        4 * tm * N_pad + 4 * tn * N_pad                      # bf16 slabs, double-buffered
        + 2 * bpe * tm * tn                                  # raw adj tile, double-buffered
        + 8 * (2 * tm * D_in + tn * D_in + tm * num_weights + 2 * tm)
        + 2 * sum(int(w.size) * w.dtype.itemsize for w in weights_list)
        + 4 * tm * D_in                                      # f32 accumulator scratch
        + 16 * tm * tn                                       # inter/sim/union f32 temps
        + 8 * tm * max(num_weights * D_slice, d_ff, d_model) # epilogue temps
    )
    vmem_limit = int(min(vmem_cap, max(2 * est_vmem, 32 * 1024 * 1024)))

    compiler_params = pltpu.CompilerParams(
        dimension_semantics=("parallel", "arbitrary"),   # row axis shards across TCs
        vmem_limit_bytes=vmem_limit)

    kernel = functools.partial(scoreformer_kernel,
                               num_weights=num_weights, num_layers=num_layers,
                               d_model=d_model, d_slice=D_slice, mxu_dtype=mxu_dtype)

    out = pl.pallas_call(
        kernel,
        out_shape=jax.ShapeDtypeStruct((1, N_pad), jnp.float32),
        grid=grid,
        in_specs=streamed_specs + weight_specs,
        out_specs=pl.BlockSpec((1, tm), lambda i, j: (0, i)),   # lane-dense output row
        scratch_shapes=[pltpu.VMEM((tm, D_in), jnp.float32)],
        compiler_params=compiler_params,
        cost_estimate=cost,
    )(*streamed_inputs, *weights_list)

    return out[0, :N]   # back to [N] (squeeze(-1) of the reference)


if __name__ == "__main__":
    # Small shapes consistent with the module's forward signature.
    N, INPUT_DIM, D_MODEL, NUM_HEADS, D_FF = 8, 16, 32, 4, 64
    NUM_LAYERS, NUM_WEIGHTS, METRICS_DIM = 2, 10, 6

    key = jax.random.PRNGKey(0)
    kx, ka, kg, kw, kp = jax.random.split(key, 5)

    x = jax.random.normal(kx, (N, INPUT_DIM), jnp.float32)
    adjacency_matrix = (jax.random.uniform(ka, (N, N)) > 0.5).astype(jnp.float32)
    graph_metrics = jax.random.normal(kg, (N, METRICS_DIM), jnp.float32)
    weights = jax.random.uniform(kw, (N, NUM_WEIGHTS), jnp.float32)

    params = init_params(kp, INPUT_DIM, D_MODEL, D_FF, NUM_LAYERS, NUM_WEIGHTS)

    # mxu_dtype=jnp.bfloat16 (default) keeps f32 accumulation but takes the fast
    # MXU path everywhere; pass jnp.float32 for bit-closer numerics.
    out = scoreformer_forward(params, x, adjacency_matrix, graph_metrics, weights,
                              num_weights=NUM_WEIGHTS, num_layers=NUM_LAYERS)
    out = jax.block_until_ready(out)
    assert out.shape == (N,) and bool(jnp.all(jnp.isfinite(out)))
    print("KERNEL_OK")
</pallas_src>

<mosaic_0001>
module attributes {stable_mosaic.version = 11 : i64} {
  func.func @scoreformer_kernel(%arg0: i32, %arg1: i32, %arg2: memref<8x8xbf16, #tpu.memory_space<vmem>>, %arg3: memref<8x8xbf16, #tpu.memory_space<vmem>>, %arg4: memref<8x8xbf16, #tpu.memory_space<vmem>>, %arg5: memref<8x16xf32, #tpu.memory_space<vmem>>, %arg6: memref<8x16xf32, #tpu.memory_space<vmem>>, %arg7: memref<8x16xf32, #tpu.memory_space<vmem>>, %arg8: memref<8x10xf32, #tpu.memory_space<vmem>>, %arg9: memref<8x1xf32, #tpu.memory_space<vmem>>, %arg10: memref<16x32xbf16, #tpu.memory_space<vmem>>, %arg11: memref<1x32xf32, #tpu.memory_space<vmem>>, %arg12: memref<16x1280xbf16, #tpu.memory_space<vmem>>, %arg13: memref<1x1280xf32, #tpu.memory_space<vmem>>, %arg14: memref<1x32xf32, #tpu.memory_space<vmem>>, %arg15: memref<1x32xf32, #tpu.memory_space<vmem>>, %arg16: memref<2x32x32xbf16, #tpu.memory_space<vmem>>, %arg17: memref<2x1x32xf32, #tpu.memory_space<vmem>>, %arg18: memref<2x32x64xbf16, #tpu.memory_space<vmem>>, %arg19: memref<2x1x64xf32, #tpu.memory_space<vmem>>, %arg20: memref<2x64x32xbf16, #tpu.memory_space<vmem>>, %arg21: memref<2x1x32xf32, #tpu.memory_space<vmem>>, %arg22: memref<2x1x32xf32, #tpu.memory_space<vmem>>, %arg23: memref<2x1x32xf32, #tpu.memory_space<vmem>>, %arg24: memref<2x1x32xf32, #tpu.memory_space<vmem>>, %arg25: memref<2x1x32xf32, #tpu.memory_space<vmem>>, %arg26: memref<32x32xbf16, #tpu.memory_space<vmem>>, %arg27: memref<1x32xf32, #tpu.memory_space<vmem>>, %arg28: memref<1x32xbf16, #tpu.memory_space<vmem>>, %arg29: memref<1x1xf32, #tpu.memory_space<vmem>>, %arg30: memref<1x8xf32, #tpu.memory_space<vmem>>, %arg31: memref<8x16xf32, #tpu.memory_space<vmem>>) attributes {dimension_semantics = [#tpu.dimension_semantics<parallel>, #tpu.dimension_semantics<arbitrary>], iteration_bounds = array<i64: 1, 1>, scalar_prefetch = 0 : i64, scratch_operands = 1 : i64, tpu.core_type = #tpu.core_type<tc>, window_params = [{transform_indices = @transform_0, window_bounds = array<i64: 8, 8>}, {transform_indices = @transform_1, window_bounds = array<i64: 8, 8>}, {transform_indices = @transform_2, window_bounds = array<i64: 8, 8>}, {transform_indices = @transform_3, window_bounds = array<i64: 8, 16>}, {transform_indices = @transform_4, window_bounds = array<i64: 8, 16>}, {transform_indices = @transform_5, window_bounds = array<i64: 8, 16>}, {transform_indices = @transform_6, window_bounds = array<i64: 8, 10>}, {transform_indices = @transform_7, window_bounds = array<i64: 8, 1>}, {pipeline_mode = #tpu.pipeline_mode<synchronous>, transform_indices = @transform_8, window_bounds = array<i64: 16, 32>}, {pipeline_mode = #tpu.pipeline_mode<synchronous>, transform_indices = @transform_9, window_bounds = array<i64: 1, 32>}, {pipeline_mode = #tpu.pipeline_mode<synchronous>, transform_indices = @transform_10, window_bounds = array<i64: 16, 1280>}, {pipeline_mode = #tpu.pipeline_mode<synchronous>, transform_indices = @transform_11, window_bounds = array<i64: 1, 1280>}, {pipeline_mode = #tpu.pipeline_mode<synchronous>, transform_indices = @transform_12, window_bounds = array<i64: 1, 32>}, {pipeline_mode = #tpu.pipeline_mode<synchronous>, transform_indices = @transform_13, window_bounds = array<i64: 1, 32>}, {pipeline_mode = #tpu.pipeline_mode<synchronous>, transform_indices = @transform_14, window_bounds = array<i64: 2, 32, 32>}, {pipeline_mode = #tpu.pipeline_mode<synchronous>, transform_indices = @transform_15, window_bounds = array<i64: 2, 1, 32>}, {pipeline_mode = #tpu.pipeline_mode<synchronous>, transform_indices = @transform_16, window_bounds = array<i64: 2, 32, 64>}, {pipeline_mode = #tpu.pipeline_mode<synchronous>, transform_indices = @transform_17, window_bounds = array<i64: 2, 1, 64>}, {pipeline_mode = #tpu.pipeline_mode<synchronous>, transform_indices = @transform_18, window_bounds = array<i64: 2, 64, 32>}, {pipeline_mode = #tpu.pipeline_mode<synchronous>, transform_indices = @transform_19, window_bounds = array<i64: 2, 1, 32>}, {pipeline_mode = #tpu.pipeline_mode<synchronous>, transform_indices = @transform_20, window_bounds = array<i64: 2, 1, 32>}, {pipeline_mode = #tpu.pipeline_mode<synchronous>, transform_indices = @transform_21, window_bounds = array<i64: 2, 1, 32>}, {pipeline_mode = #tpu.pipeline_mode<synchronous>, transform_indices = @transform_22, window_bounds = array<i64: 2, 1, 32>}, {pipeline_mode = #tpu.pipeline_mode<synchronous>, transform_indices = @transform_23, window_bounds = array<i64: 2, 1, 32>}, {pipeline_mode = #tpu.pipeline_mode<synchronous>, transform_indices = @transform_24, window_bounds = array<i64: 32, 32>}, {pipeline_mode = #tpu.pipeline_mode<synchronous>, transform_indices = @transform_25, window_bounds = array<i64: 1, 32>}, {pipeline_mode = #tpu.pipeline_mode<synchronous>, transform_indices = @transform_26, window_bounds = array<i64: 1, 32>}, {pipeline_mode = #tpu.pipeline_mode<synchronous>, transform_indices = @transform_27, window_bounds = array<i64: 1, 1>}, {transform_indices = @transform_28, window_bounds = array<i64: 1, 8>}]} {
    %c0_i32 = arith.constant 0 : i32
    %0 = arith.cmpi eq, %arg1, %c0_i32 : i32
    %1 = arith.extui %0 : i1 to i32
    %c0_i32_0 = arith.constant 0 : i32
    %2 = arith.cmpi ne, %1, %c0_i32_0 : i32
    scf.if %2 {
      %c0_18 = arith.constant 0 : index
      %c0_19 = arith.constant 0 : index
      %26 = vector.load %arg7[%c0_18, %c0_19] : memref<8x16xf32, #tpu.memory_space<vmem>>, vector<8x16xf32>
      %c0_20 = arith.constant 0 : index
      %c0_21 = arith.constant 0 : index
      %27 = vector.load %arg5[%c0_20, %c0_21] : memref<8x16xf32, #tpu.memory_space<vmem>>, vector<8x16xf32>
      %28 = arith.mulf %26, %27 : vector<8x16xf32>
      %c0_22 = arith.constant 0 : index
      %c0_23 = arith.constant 0 : index
      %29 = vector.load %arg31[%c0_22, %c0_23] : memref<8x16xf32, #tpu.memory_space<vmem>>, vector<8x16xf32>
      tpu.vector_store %arg31[%c0_22, %c0_23], %28 {strides = array<i32>} : memref<8x16xf32, #tpu.memory_space<vmem>>, vector<8x16xf32>,
    } else {
    }
    %c0 = arith.constant 0 : index
    %c0_1 = arith.constant 0 : index
    %3 = vector.load %arg3[%c0, %c0_1] : memref<8x8xbf16, #tpu.memory_space<vmem>>, vector<8x8xbf16>
    %c0_2 = arith.constant 0 : index
    %c0_3 = arith.constant 0 : index
    %4 = vector.load %arg4[%c0_2, %c0_3] : memref<8x8xbf16, #tpu.memory_space<vmem>>, vector<8x8xbf16>
    %cst = arith.constant dense<0.000000e+00> : vector<8x8xf32>
    %5 = tpu.matmul %3, %4, %cst {dimension_numbers = #tpu.dot_dimension_numbers<[1], [1], [0], [0], [0, 0, 1, 0], [], []>} : vector<8x8xbf16>, vector<8x8xbf16>, vector<8x8xf32> -> vector<8x8xf32>
    %c0_4 = arith.constant 0 : index
    %c0_5 = arith.constant 0 : index
    %6 = vector.load %arg9[%c0_4, %c0_5] : memref<8x1xf32, #tpu.memory_space<vmem>>, vector<8x1xf32>
    %7 = vector.broadcast %6 : vector<8x1xf32> to vector<8x8xf32>
    %8 = arith.subf %7, %5 : vector<8x8xf32>
    %cst_6 = arith.constant 9.99999993E-9 : f32
    %9 = vector.broadcast %cst_6 : f32 to vector<8x8xf32>
    %10 = arith.addf %8, %9 : vector<8x8xf32>
    %11 = tpu.reciprocal %10 {approx = true} : vector<8x8xf32> -> vector<8x8xf32>
    %12 = arith.mulf %5, %11 : vector<8x8xf32>
    %c0_7 = arith.constant 0 : index
    %c0_8 = arith.constant 0 : index
    %13 = vector.load %arg31[%c0_7, %c0_8] : memref<8x16xf32, #tpu.memory_space<vmem>>, vector<8x16xf32>
    %c0_9 = arith.constant 0 : index
    %c0_10 = arith.constant 0 : index
    %14 = vector.load %arg2[%c0_9, %c0_10] : memref<8x8xbf16, #tpu.memory_space<vmem>>, vector<8x8xbf16>
    %15 = arith.extf %14 : vector<8x8xbf16> to vector<8x8xf32>
    %16 = arith.addf %15, %12 : vector<8x8xf32>
    %c0_11 = arith.constant 0 : index
    %c0_12 = arith.constant 0 : index
    %17 = vector.load %arg6[%c0_11, %c0_12] : memref<8x16xf32, #tpu.memory_space<vmem>>, vector<8x16xf32>
    %18 = arith.truncf %16 : vector<8x8xf32> to vector<8x8xbf16>
    %19 = arith.truncf %17 : vector<8x16xf32> to vector<8x16xbf16>
    %cst_13 = arith.constant dense<0.000000e+00> : vector<8x16xf32>
    %20 = tpu.matmul %18, %19, %cst_13 {dimension_numbers = #tpu.dot_dimension_numbers<[1], [0], [0], [1], [0, 0, 1, 1], [], []>} : vector<8x8xbf16>, vector<8x16xbf16>, vector<8x16xf32> -> vector<8x16xf32>
    %21 = arith.addf %13, %20 : vector<8x16xf32>
    %c0_14 = arith.constant 0 : index
    %c0_15 = arith.constant 0 : index
    %22 = vector.load %arg31[%c0_14, %c0_15] : memref<8x16xf32, #tpu.memory_space<vmem>>, vector<8x16xf32>
    tpu.vector_store %arg31[%c0_14, %c0_15], %21 {strides = array<i32>} : memref<8x16xf32, #tpu.memory_space<vmem>>, vector<8x16xf32>,
    %c0_i32_16 = arith.constant 0 : i32
    %23 = arith.cmpi eq, %arg1, %c0_i32_16 : i32
    %24 = arith.extui %23 : i1 to i32
    %c0_i32_17 = arith.constant 0 : i32
    %25 = arith.cmpi ne, %24, %c0_i32_17 : i32
    scf.if %25 {
      %c0_18 = arith.constant 0 : index
      %c0_19 = arith.constant 0 : index
      %26 = vector.load %arg5[%c0_18, %c0_19] : memref<8x16xf32, #tpu.memory_space<vmem>>, vector<8x16xf32>
      %c0_20 = arith.constant 0 : index
      %c0_21 = arith.constant 0 : index
      %27 = vector.load %arg31[%c0_20, %c0_21] : memref<8x16xf32, #tpu.memory_space<vmem>>, vector<8x16xf32>
      %c0_22 = arith.constant 0 : index
      %c0_23 = arith.constant 0 : index
      %28 = vector.load %arg10[%c0_22, %c0_23] : memref<16x32xbf16, #tpu.memory_space<vmem>>, vector<16x32xbf16>
      %29 = arith.truncf %27 : vector<8x16xf32> to vector<8x16xbf16>
      %cst_24 = arith.constant dense<0.000000e+00> : vector<8x32xf32>
      %30 = tpu.matmul %29, %28, %cst_24 {dimension_numbers = #tpu.dot_dimension_numbers<[1], [0], [0], [1], [0, 0, 1, 1], [], []>} : vector<8x16xbf16>, vector<16x32xbf16>, vector<8x32xf32> -> vector<8x32xf32>
      %c0_25 = arith.constant 0 : index
      %c0_26 = arith.constant 0 : index
      %31 = vector.load %arg11[%c0_25, %c0_26] : memref<1x32xf32, #tpu.memory_space<vmem>>, vector<1x32xf32>
      %32 = vector.broadcast %31 : vector<1x32xf32> to vector<8x32xf32>
      %33 = arith.addf %30, %32 : vector<8x32xf32>
      %c0_27 = arith.constant 0 : index
      %c0_28 = arith.constant 0 : index
      %34 = vector.load %arg12[%c0_27, %c0_28] : memref<16x1280xbf16, #tpu.memory_space<vmem>>, vector<16x1280xbf16>
      %35 = arith.truncf %26 : vector<8x16xf32> to vector<8x16xbf16>
      %cst_29 = arith.constant dense<0.000000e+00> : vector<8x1280xf32>
      %36 = tpu.matmul %35, %34, %cst_29 {dimension_numbers = #tpu.dot_dimension_numbers<[1], [0], [0], [1], [0, 0, 1, 1], [], []>} : vector<8x16xbf16>, vector<16x1280xbf16>, vector<8x1280xf32> -> vector<8x1280xf32>
      %c0_30 = arith.constant 0 : index
      %c0_31 = arith.constant 0 : index
      %37 = vector.load %arg13[%c0_30, %c0_31] : memref<1x1280xf32, #tpu.memory_space<vmem>>, vector<1x1280xf32>
      %38 = vector.broadcast %37 : vector<1x1280xf32> to vector<8x1280xf32>
      %39 = arith.addf %36, %38 : vector<8x1280xf32>
      %c0_32 = arith.constant 0 : index
      %c0_33 = arith.constant 0 : index
      %40 = vector.load %arg8[%c0_32, %c0_33] : memref<8x10xf32, #tpu.memory_space<vmem>>, vector<8x10xf32>
      %cst_34 = arith.constant 0.000000e+00 : f32
      %41 = vector.broadcast %cst_34 : f32 to vector<8x128xf32>
      %42 = vector.extract_strided_slice %39 {offsets = [0, 0], sizes = [8, 128], strides = [1, 1]} : vector<8x1280xf32> to vector<8x128xf32>
      %43 = vector.extract_strided_slice %40 {offsets = [0, 0], sizes = [8, 1], strides = [1, 1]} : vector<8x10xf32> to vector<8x1xf32>
      %44 = vector.broadcast %43 : vector<8x1xf32> to vector<8x128xf32>
      %45 = arith.mulf %42, %44 : vector<8x128xf32>
      %46 = arith.addf %41, %45 : vector<8x128xf32>
      %47 = vector.extract_strided_slice %39 {offsets = [0, 128], sizes = [8, 128], strides = [1, 1]} : vector<8x1280xf32> to vector<8x128xf32>
      %48 = vector.extract_strided_slice %40 {offsets = [0, 1], sizes = [8, 1], strides = [1, 1]} : vector<8x10xf32> to vector<8x1xf32>
      %49 = vector.broadcast %48 : vector<8x1xf32> to vector<8x128xf32>
      %50 = arith.mulf %47, %49 : vector<8x128xf32>
      %51 = arith.addf %46, %50 : vector<8x128xf32>
      %52 = vector.extract_strided_slice %39 {offsets = [0, 256], sizes = [8, 128], strides = [1, 1]} : vector<8x1280xf32> to vector<8x128xf32>
      %53 = vector.extract_strided_slice %40 {offsets = [0, 2], sizes = [8, 1], strides = [1, 1]} : vector<8x10xf32> to vector<8x1xf32>
      %54 = vector.broadcast %53 : vector<8x1xf32> to vector<8x128xf32>
      %55 = arith.mulf %52, %54 : vector<8x128xf32>
      %56 = arith.addf %51, %55 : vector<8x128xf32>
      %57 = vector.extract_strided_slice %39 {offsets = [0, 384], sizes = [8, 128], strides = [1, 1]} : vector<8x1280xf32> to vector<8x128xf32>
      %58 = vector.extract_strided_slice %40 {offsets = [0, 3], sizes = [8, 1], strides = [1, 1]} : vector<8x10xf32> to vector<8x1xf32>
      %59 = vector.broadcast %58 : vector<8x1xf32> to vector<8x128xf32>
      %60 = arith.mulf %57, %59 : vector<8x128xf32>
      %61 = arith.addf %56, %60 : vector<8x128xf32>
      %62 = vector.extract_strided_slice %39 {offsets = [0, 512], sizes = [8, 128], strides = [1, 1]} : vector<8x1280xf32> to vector<8x128xf32>
      %63 = vector.extract_strided_slice %40 {offsets = [0, 4], sizes = [8, 1], strides = [1, 1]} : vector<8x10xf32> to vector<8x1xf32>
      %64 = vector.broadcast %63 : vector<8x1xf32> to vector<8x128xf32>
      %65 = arith.mulf %62, %64 : vector<8x128xf32>
      %66 = arith.addf %61, %65 : vector<8x128xf32>
      %67 = vector.extract_strided_slice %39 {offsets = [0, 640], sizes = [8, 128], strides = [1, 1]} : vector<8x1280xf32> to vector<8x128xf32>
      %68 = vector.extract_strided_slice %40 {offsets = [0, 5], sizes = [8, 1], strides = [1, 1]} : vector<8x10xf32> to vector<8x1xf32>
      %69 = vector.broadcast %68 : vector<8x1xf32> to vector<8x128xf32>
      %70 = arith.mulf %67, %69 : vector<8x128xf32>
      %71 = arith.addf %66, %70 : vector<8x128xf32>
      %72 = vector.extract_strided_slice %39 {offsets = [0, 768], sizes = [8, 128], strides = [1, 1]} : vector<8x1280xf32> to vector<8x128xf32>
      %73 = vector.extract_strided_slice %40 {offsets = [0, 6], sizes = [8, 1], strides = [1, 1]} : vector<8x10xf32> to vector<8x1xf32>
      %74 = vector.broadcast %73 : vector<8x1xf32> to vector<8x128xf32>
      %75 = arith.mulf %72, %74 : vector<8x128xf32>
      %76 = arith.addf %71, %75 : vector<8x128xf32>
      %77 = vector.extract_strided_slice %39 {offsets = [0, 896], sizes = [8, 128], strides = [1, 1]} : vector<8x1280xf32> to vector<8x128xf32>
      %78 = vector.extract_strided_slice %40 {offsets = [0, 7], sizes = [8, 1], strides = [1, 1]} : vector<8x10xf32> to vector<8x1xf32>
      %79 = vector.broadcast %78 : vector<8x1xf32> to vector<8x128xf32>
      %80 = arith.mulf %77, %79 : vector<8x128xf32>
      %81 = arith.addf %76, %80 : vector<8x128xf32>
      %82 = vector.extract_strided_slice %39 {offsets = [0, 1024], sizes = [8, 128], strides = [1, 1]} : vector<8x1280xf32> to vector<8x128xf32>
      %83 = vector.extract_strided_slice %40 {offsets = [0, 8], sizes = [8, 1], strides = [1, 1]} : vector<8x10xf32> to vector<8x1xf32>
      %84 = vector.broadcast %83 : vector<8x1xf32> to vector<8x128xf32>
      %85 = arith.mulf %82, %84 : vector<8x128xf32>
      %86 = arith.addf %81, %85 : vector<8x128xf32>
      %87 = vector.extract_strided_slice %39 {offsets = [0, 1152], sizes = [8, 128], strides = [1, 1]} : vector<8x1280xf32> to vector<8x128xf32>
      %88 = vector.extract_strided_slice %40 {offsets = [0, 9], sizes = [8, 1], strides = [1, 1]} : vector<8x10xf32> to vector<8x1xf32>
      %89 = vector.broadcast %88 : vector<8x1xf32> to vector<8x128xf32>
      %90 = arith.mulf %87, %89 : vector<8x128xf32>
      %91 = arith.addf %86, %90 : vector<8x128xf32>
      %92 = vector.extract_strided_slice %91 {offsets = [0, 0], sizes = [8, 32], strides = [1, 1]} : vector<8x128xf32> to vector<8x32xf32>
      %c0_35 = arith.constant 0 : index
      %c0_36 = arith.constant 0 : index
      %93 = vector.load %arg14[%c0_35, %c0_36] : memref<1x32xf32, #tpu.memory_space<vmem>>, vector<1x32xf32>
      %c0_37 = arith.constant 0 : index
      %c0_38 = arith.constant 0 : index
      %94 = vector.load %arg15[%c0_37, %c0_38] : memref<1x32xf32, #tpu.memory_space<vmem>>, vector<1x32xf32>
      %cst_39 = arith.constant dense<0.000000e+00> : vector<8xf32>
      %95 = vector.multi_reduction <add>, %92, %cst_39 [1] : vector<8x32xf32> to vector<8xf32>
      %96 = vector.shape_cast %95 : vector<8xf32> to vector<8x1xf32>
      %cst_40 = arith.constant 3.200000e+01 : f32
      %97 = vector.broadcast %cst_40 : f32 to vector<8x1xf32>
      %98 = arith.divf %96, %97 : vector<8x1xf32>
      %99 = vector.broadcast %98 : vector<8x1xf32> to vector<8x32xf32>
      %100 = arith.subf %92, %99 : vector<8x32xf32>
      %101 = arith.mulf %100, %100 : vector<8x32xf32>
      %cst_41 = arith.constant dense<0.000000e+00> : vector<8xf32>
      %102 = vector.multi_reduction <add>, %101, %cst_41 [1] : vector<8x32xf32> to vector<8xf32>
      %103 = vector.shape_cast %102 : vector<8xf32> to vector<8x1xf32>
      %cst_42 = arith.constant 3.200000e+01 : f32
      %104 = vector.broadcast %cst_42 : f32 to vector<8x1xf32>
      %105 = arith.divf %103, %104 : vector<8x1xf32>
      %106 = vector.broadcast %98 : vector<8x1xf32> to vector<8x32xf32>
      %107 = arith.subf %92, %106 : vector<8x32xf32>
      %cst_43 = arith.constant 9.99999974E-6 : f32
      %108 = vector.broadcast %cst_43 : f32 to vector<8x1xf32>
      %109 = arith.addf %105, %108 : vector<8x1xf32>
      %110 = math.rsqrt %109 : vector<8x1xf32>
      %111 = vector.broadcast %110 : vector<8x1xf32> to vector<8x32xf32>
      %112 = arith.mulf %107, %111 : vector<8x32xf32>
      %113 = vector.broadcast %93 : vector<1x32xf32> to vector<8x32xf32>
      %114 = arith.mulf %112, %113 : vector<8x32xf32>
      %115 = vector.broadcast %94 : vector<1x32xf32> to vector<8x32xf32>
      %116 = arith.addf %114, %115 : vector<8x32xf32>
      %c0_44 = arith.constant 0 : index
      %c0_45 = arith.constant 0 : index
      %c0_46 = arith.constant 0 : index
      %117 = vector.load %arg16[%c0_44, %c0_45, %c0_46] : memref<2x32x32xbf16, #tpu.memory_space<vmem>>, vector<1x32x32xbf16>
      %118 = vector.shape_cast %117 : vector<1x32x32xbf16> to vector<32x32xbf16>
      %119 = arith.truncf %116 : vector<8x32xf32> to vector<8x32xbf16>
      %cst_47 = arith.constant dense<0.000000e+00> : vector<8x32xf32>
      %120 = tpu.matmul %119, %118, %cst_47 {dimension_numbers = #tpu.dot_dimension_numbers<[1], [0], [0], [1], [0, 0, 1, 1], [], []>} : vector<8x32xbf16>, vector<32x32xbf16>, vector<8x32xf32> -> vector<8x32xf32>
      %c0_48 = arith.constant 0 : index
      %c0_49 = arith.constant 0 : index
      %c0_50 = arith.constant 0 : index
      %121 = vector.load %arg17[%c0_48, %c0_49, %c0_50] : memref<2x1x32xf32, #tpu.memory_space<vmem>>, vector<1x1x32xf32>
      %122 = vector.shape_cast %121 : vector<1x1x32xf32> to vector<1x32xf32>
      %123 = vector.broadcast %122 : vector<1x32xf32> to vector<8x32xf32>
      %124 = arith.addf %120, %123 : vector<8x32xf32>
      %125 = arith.addf %116, %124 : vector<8x32xf32>
      %c0_51 = arith.constant 0 : index
      %c0_52 = arith.constant 0 : index
      %c0_53 = arith.constant 0 : index
      %126 = vector.load %arg22[%c0_51, %c0_52, %c0_53] : memref<2x1x32xf32, #tpu.memory_space<vmem>>, vector<1x1x32xf32>
      %127 = vector.shape_cast %126 : vector<1x1x32xf32> to vector<1x32xf32>
      %c0_54 = arith.constant 0 : index
      %c0_55 = arith.constant 0 : index
      %c0_56 = arith.constant 0 : index
      %128 = vector.load %arg23[%c0_54, %c0_55, %c0_56] : memref<2x1x32xf32, #tpu.memory_space<vmem>>, vector<1x1x32xf32>
      %129 = vector.shape_cast %128 : vector<1x1x32xf32> to vector<1x32xf32>
      %cst_57 = arith.constant dense<0.000000e+00> : vector<8xf32>
      %130 = vector.multi_reduction <add>, %125, %cst_57 [1] : vector<8x32xf32> to vector<8xf32>
      %131 = vector.shape_cast %130 : vector<8xf32> to vector<8x1xf32>
      %cst_58 = arith.constant 3.200000e+01 : f32
      %132 = vector.broadcast %cst_58 : f32 to vector<8x1xf32>
      %133 = arith.divf %131, %132 : vector<8x1xf32>
      %134 = vector.broadcast %133 : vector<8x1xf32> to vector<8x32xf32>
      %135 = arith.subf %125, %134 : vector<8x32xf32>
      %136 = arith.mulf %135, %135 : vector<8x32xf32>
      %cst_59 = arith.constant dense<0.000000e+00> : vector<8xf32>
      %137 = vector.multi_reduction <add>, %136, %cst_59 [1] : vector<8x32xf32> to vector<8xf32>
      %138 = vector.shape_cast %137 : vector<8xf32> to vector<8x1xf32>
      %cst_60 = arith.constant 3.200000e+01 : f32
      %139 = vector.broadcast %cst_60 : f32 to vector<8x1xf32>
      %140 = arith.divf %138, %139 : vector<8x1xf32>
      %141 = vector.broadcast %133 : vector<8x1xf32> to vector<8x32xf32>
      %142 = arith.subf %125, %141 : vector<8x32xf32>
      %cst_61 = arith.constant 9.99999974E-6 : f32
      %143 = vector.broadcast %cst_61 : f32 to vector<8x1xf32>
      %144 = arith.addf %140, %143 : vector<8x1xf32>
      %145 = math.rsqrt %144 : vector<8x1xf32>
      %146 = vector.broadcast %145 : vector<8x1xf32> to vector<8x32xf32>
      %147 = arith.mulf %142, %146 : vector<8x32xf32>
      %148 = vector.broadcast %127 : vector<1x32xf32> to vector<8x32xf32>
      %149 = arith.mulf %147, %148 : vector<8x32xf32>
      %150 = vector.broadcast %129 : vector<1x32xf32> to vector<8x32xf32>
      %151 = arith.addf %149, %150 : vector<8x32xf32>
      %c0_62 = arith.constant 0 : index
      %c0_63 = arith.constant 0 : index
      %c0_64 = arith.constant 0 : index
      %152 = vector.load %arg18[%c0_62, %c0_63, %c0_64] : memref<2x32x64xbf16, #tpu.memory_space<vmem>>, vector<1x32x64xbf16>
      %153 = vector.shape_cast %152 : vector<1x32x64xbf16> to vector<32x64xbf16>
      %154 = arith.truncf %151 : vector<8x32xf32> to vector<8x32xbf16>
      %cst_65 = arith.constant dense<0.000000e+00> : vector<8x64xf32>
      %155 = tpu.matmul %154, %153, %cst_65 {dimension_numbers = #tpu.dot_dimension_numbers<[1], [0], [0], [1], [0, 0, 1, 1], [], []>} : vector<8x32xbf16>, vector<32x64xbf16>, vector<8x64xf32> -> vector<8x64xf32>
      %c0_66 = arith.constant 0 : index
      %c0_67 = arith.constant 0 : index
      %c0_68 = arith.constant 0 : index
      %156 = vector.load %arg19[%c0_66, %c0_67, %c0_68] : memref<2x1x64xf32, #tpu.memory_space<vmem>>, vector<1x1x64xf32>
      %157 = vector.shape_cast %156 : vector<1x1x64xf32> to vector<1x64xf32>
      %158 = vector.broadcast %157 : vector<1x64xf32> to vector<8x64xf32>
      %159 = arith.addf %155, %158 : vector<8x64xf32>
      %cst_69 = arith.constant 0.000000e+00 : f32
      %160 = vector.broadcast %cst_69 : f32 to vector<8x64xf32>
      %161 = arith.maximumf %159, %160 : vector<8x64xf32>
      %c0_70 = arith.constant 0 : index
      %c0_71 = arith.constant 0 : index
      %c0_72 = arith.constant 0 : index
      %162 = vector.load %arg20[%c0_70, %c0_71, %c0_72] : memref<2x64x32xbf16, #tpu.memory_space<vmem>>, vector<1x64x32xbf16>
      %163 = vector.shape_cast %162 : vector<1x64x32xbf16> to vector<64x32xbf16>
      %164 = arith.truncf %161 : vector<8x64xf32> to vector<8x64xbf16>
      %cst_73 = arith.constant dense<0.000000e+00> : vector<8x32xf32>
      %165 = tpu.matmul %164, %163, %cst_73 {dimension_numbers = #tpu.dot_dimension_numbers<[1], [0], [0], [1], [0, 0, 1, 1], [], []>} : vector<8x64xbf16>, vector<64x32xbf16>, vector<8x32xf32> -> vector<8x32xf32>
      %c0_74 = arith.constant 0 : index
      %c0_75 = arith.constant 0 : index
      %c0_76 = arith.constant 0 : index
      %166 = vector.load %arg21[%c0_74, %c0_75, %c0_76] : memref<2x1x32xf32, #tpu.memory_space<vmem>>, vector<1x1x32xf32>
      %167 = vector.shape_cast %166 : vector<1x1x32xf32> to vector<1x32xf32>
      %168 = vector.broadcast %167 : vector<1x32xf32> to vector<8x32xf32>
      %169 = arith.addf %165, %168 : vector<8x32xf32>
      %170 = arith.addf %151, %169 : vector<8x32xf32>
      %c0_77 = arith.constant 0 : index
      %c0_78 = arith.constant 0 : index
      %c0_79 = arith.constant 0 : index
      %171 = vector.load %arg24[%c0_77, %c0_78, %c0_79] : memref<2x1x32xf32, #tpu.memory_space<vmem>>, vector<1x1x32xf32>
      %172 = vector.shape_cast %171 : vector<1x1x32xf32> to vector<1x32xf32>
      %c0_80 = arith.constant 0 : index
      %c0_81 = arith.constant 0 : index
      %c0_82 = arith.constant 0 : index
      %173 = vector.load %arg25[%c0_80, %c0_81, %c0_82] : memref<2x1x32xf32, #tpu.memory_space<vmem>>, vector<1x1x32xf32>
      %174 = vector.shape_cast %173 : vector<1x1x32xf32> to vector<1x32xf32>
      %cst_83 = arith.constant dense<0.000000e+00> : vector<8xf32>
      %175 = vector.multi_reduction <add>, %170, %cst_83 [1] : vector<8x32xf32> to vector<8xf32>
      %176 = vector.shape_cast %175 : vector<8xf32> to vector<8x1xf32>
      %cst_84 = arith.constant 3.200000e+01 : f32
      %177 = vector.broadcast %cst_84 : f32 to vector<8x1xf32>
      %178 = arith.divf %176, %177 : vector<8x1xf32>
      %179 = vector.broadcast %178 : vector<8x1xf32> to vector<8x32xf32>
      %180 = arith.subf %170, %179 : vector<8x32xf32>
      %181 = arith.mulf %180, %180 : vector<8x32xf32>
      %cst_85 = arith.constant dense<0.000000e+00> : vector<8xf32>
      %182 = vector.multi_reduction <add>, %181, %cst_85 [1] : vector<8x32xf32> to vector<8xf32>
      %183 = vector.shape_cast %182 : vector<8xf32> to vector<8x1xf32>
      %cst_86 = arith.constant 3.200000e+01 : f32
      %184 = vector.broadcast %cst_86 : f32 to vector<8x1xf32>
      %185 = arith.divf %183, %184 : vector<8x1xf32>
      %186 = vector.broadcast %178 : vector<8x1xf32> to vector<8x32xf32>
      %187 = arith.subf %170, %186 : vector<8x32xf32>
      %cst_87 = arith.constant 9.99999974E-6 : f32
      %188 = vector.broadcast %cst_87 : f32 to vector<8x1xf32>
      %189 = arith.addf %185, %188 : vector<8x1xf32>
      %190 = math.rsqrt %189 : vector<8x1xf32>
      %191 = vector.broadcast %190 : vector<8x1xf32> to vector<8x32xf32>
      %192 = arith.mulf %187, %191 : vector<8x32xf32>
      %193 = vector.broadcast %172 : vector<1x32xf32> to vector<8x32xf32>
      %194 = arith.mulf %192, %193 : vector<8x32xf32>
      %195 = vector.broadcast %174 : vector<1x32xf32> to vector<8x32xf32>
      %196 = arith.addf %194, %195 : vector<8x32xf32>
      %c1 = arith.constant 1 : index
      %c0_88 = arith.constant 0 : index
      %c0_89 = arith.constant 0 : index
      %197 = vector.load %arg16[%c1, %c0_88, %c0_89] : memref<2x32x32xbf16, #tpu.memory_space<vmem>>, vector<1x32x32xbf16>
      %198 = vector.shape_cast %197 : vector<1x32x32xbf16> to vector<32x32xbf16>
      %199 = arith.truncf %196 : vector<8x32xf32> to vector<8x32xbf16>
      %cst_90 = arith.constant dense<0.000000e+00> : vector<8x32xf32>
      %200 = tpu.matmul %199, %198, %cst_90 {dimension_numbers = #tpu.dot_dimension_numbers<[1], [0], [0], [1], [0, 0, 1, 1], [], []>} : vector<8x32xbf16>, vector<32x32xbf16>, vector<8x32xf32> -> vector<8x32xf32>
      %c1_91 = arith.constant 1 : index
      %c0_92 = arith.constant 0 : index
      %c0_93 = arith.constant 0 : index
      %201 = vector.load %arg17[%c1_91, %c0_92, %c0_93] : memref<2x1x32xf32, #tpu.memory_space<vmem>>, vector<1x1x32xf32>
      %202 = vector.shape_cast %201 : vector<1x1x32xf32> to vector<1x32xf32>
      %203 = vector.broadcast %202 : vector<1x32xf32> to vector<8x32xf32>
      %204 = arith.addf %200, %203 : vector<8x32xf32>
      %205 = arith.addf %196, %204 : vector<8x32xf32>
      %c1_94 = arith.constant 1 : index
      %c0_95 = arith.constant 0 : index
      %c0_96 = arith.constant 0 : index
      %206 = vector.load %arg22[%c1_94, %c0_95, %c0_96] : memref<2x1x32xf32, #tpu.memory_space<vmem>>, vector<1x1x32xf32>
      %207 = vector.shape_cast %206 : vector<1x1x32xf32> to vector<1x32xf32>
      %c1_97 = arith.constant 1 : index
      %c0_98 = arith.constant 0 : index
      %c0_99 = arith.constant 0 : index
      %208 = vector.load %arg23[%c1_97, %c0_98, %c0_99] : memref<2x1x32xf32, #tpu.memory_space<vmem>>, vector<1x1x32xf32>
      %209 = vector.shape_cast %208 : vector<1x1x32xf32> to vector<1x32xf32>
      %cst_100 = arith.constant dense<0.000000e+00> : vector<8xf32>
      %210 = vector.multi_reduction <add>, %205, %cst_100 [1] : vector<8x32xf32> to vector<8xf32>
      %211 = vector.shape_cast %210 : vector<8xf32> to vector<8x1xf32>
      %cst_101 = arith.constant 3.200000e+01 : f32
      %212 = vector.broadcast %cst_101 : f32 to vector<8x1xf32>
      %213 = arith.divf %211, %212 : vector<8x1xf32>
      %214 = vector.broadcast %213 : vector<8x1xf32> to vector<8x32xf32>
      %215 = arith.subf %205, %214 : vector<8x32xf32>
      %216 = arith.mulf %215, %215 : vector<8x32xf32>
      %cst_102 = arith.constant dense<0.000000e+00> : vector<8xf32>
      %217 = vector.multi_reduction <add>, %216, %cst_102 [1] : vector<8x32xf32> to vector<8xf32>
      %218 = vector.shape_cast %217 : vector<8xf32> to vector<8x1xf32>
      %cst_103 = arith.constant 3.200000e+01 : f32
      %219 = vector.broadcast %cst_103 : f32 to vector<8x1xf32>
      %220 = arith.divf %218, %219 : vector<8x1xf32>
      %221 = vector.broadcast %213 : vector<8x1xf32> to vector<8x32xf32>
      %222 = arith.subf %205, %221 : vector<8x32xf32>
      %cst_104 = arith.constant 9.99999974E-6 : f32
      %223 = vector.broadcast %cst_104 : f32 to vector<8x1xf32>
      %224 = arith.addf %220, %223 : vector<8x1xf32>
      %225 = math.rsqrt %224 : vector<8x1xf32>
      %226 = vector.broadcast %225 : vector<8x1xf32> to vector<8x32xf32>
      %227 = arith.mulf %222, %226 : vector<8x32xf32>
      %228 = vector.broadcast %207 : vector<1x32xf32> to vector<8x32xf32>
      %229 = arith.mulf %227, %228 : vector<8x32xf32>
      %230 = vector.broadcast %209 : vector<1x32xf32> to vector<8x32xf32>
      %231 = arith.addf %229, %230 : vector<8x32xf32>
      %c1_105 = arith.constant 1 : index
      %c0_106 = arith.constant 0 : index
      %c0_107 = arith.constant 0 : index
      %232 = vector.load %arg18[%c1_105, %c0_106, %c0_107] : memref<2x32x64xbf16, #tpu.memory_space<vmem>>, vector<1x32x64xbf16>
      %233 = vector.shape_cast %232 : vector<1x32x64xbf16> to vector<32x64xbf16>
      %234 = arith.truncf %231 : vector<8x32xf32> to vector<8x32xbf16>
      %cst_108 = arith.constant dense<0.000000e+00> : vector<8x64xf32>
      %235 = tpu.matmul %234, %233, %cst_108 {dimension_numbers = #tpu.dot_dimension_numbers<[1], [0], [0], [1], [0, 0, 1, 1], [], []>} : vector<8x32xbf16>, vector<32x64xbf16>, vector<8x64xf32> -> vector<8x64xf32>
      %c1_109 = arith.constant 1 : index
      %c0_110 = arith.constant 0 : index
      %c0_111 = arith.constant 0 : index
      %236 = vector.load %arg19[%c1_109, %c0_110, %c0_111] : memref<2x1x64xf32, #tpu.memory_space<vmem>>, vector<1x1x64xf32>
      %237 = vector.shape_cast %236 : vector<1x1x64xf32> to vector<1x64xf32>
      %238 = vector.broadcast %237 : vector<1x64xf32> to vector<8x64xf32>
      %239 = arith.addf %235, %238 : vector<8x64xf32>
      %cst_112 = arith.constant 0.000000e+00 : f32
      %240 = vector.broadcast %cst_112 : f32 to vector<8x64xf32>
      %241 = arith.maximumf %239, %240 : vector<8x64xf32>
      %c1_113 = arith.constant 1 : index
      %c0_114 = arith.constant 0 : index
      %c0_115 = arith.constant 0 : index
      %242 = vector.load %arg20[%c1_113, %c0_114, %c0_115] : memref<2x64x32xbf16, #tpu.memory_space<vmem>>, vector<1x64x32xbf16>
      %243 = vector.shape_cast %242 : vector<1x64x32xbf16> to vector<64x32xbf16>
      %244 = arith.truncf %241 : vector<8x64xf32> to vector<8x64xbf16>
      %cst_116 = arith.constant dense<0.000000e+00> : vector<8x32xf32>
      %245 = tpu.matmul %244, %243, %cst_116 {dimension_numbers = #tpu.dot_dimension_numbers<[1], [0], [0], [1], [0, 0, 1, 1], [], []>} : vector<8x64xbf16>, vector<64x32xbf16>, vector<8x32xf32> -> vector<8x32xf32>
      %c1_117 = arith.constant 1 : index
      %c0_118 = arith.constant 0 : index
      %c0_119 = arith.constant 0 : index
      %246 = vector.load %arg21[%c1_117, %c0_118, %c0_119] : memref<2x1x32xf32, #tpu.memory_space<vmem>>, vector<1x1x32xf32>
      %247 = vector.shape_cast %246 : vector<1x1x32xf32> to vector<1x32xf32>
      %248 = vector.broadcast %247 : vector<1x32xf32> to vector<8x32xf32>
      %249 = arith.addf %245, %248 : vector<8x32xf32>
      %250 = arith.addf %231, %249 : vector<8x32xf32>
      %c1_120 = arith.constant 1 : index
      %c0_121 = arith.constant 0 : index
      %c0_122 = arith.constant 0 : index
      %251 = vector.load %arg24[%c1_120, %c0_121, %c0_122] : memref<2x1x32xf32, #tpu.memory_space<vmem>>, vector<1x1x32xf32>
      %252 = vector.shape_cast %251 : vector<1x1x32xf32> to vector<1x32xf32>
      %c1_123 = arith.constant 1 : index
      %c0_124 = arith.constant 0 : index
      %c0_125 = arith.constant 0 : index
      %253 = vector.load %arg25[%c1_123, %c0_124, %c0_125] : memref<2x1x32xf32, #tpu.memory_space<vmem>>, vector<1x1x32xf32>
      %254 = vector.shape_cast %253 : vector<1x1x32xf32> to vector<1x32xf32>
      %cst_126 = arith.constant dense<0.000000e+00> : vector<8xf32>
      %255 = vector.multi_reduction <add>, %250, %cst_126 [1] : vector<8x32xf32> to vector<8xf32>
      %256 = vector.shape_cast %255 : vector<8xf32> to vector<8x1xf32>
      %cst_127 = arith.constant 3.200000e+01 : f32
      %257 = vector.broadcast %cst_127 : f32 to vector<8x1xf32>
      %258 = arith.divf %256, %257 : vector<8x1xf32>
      %259 = vector.broadcast %258 : vector<8x1xf32> to vector<8x32xf32>
      %260 = arith.subf %250, %259 : vector<8x32xf32>
      %261 = arith.mulf %260, %260 : vector<8x32xf32>
      %cst_128 = arith.constant dense<0.000000e+00> : vector<8xf32>
      %262 = vector.multi_reduction <add>, %261, %cst_128 [1] : vector<8x32xf32> to vector<8xf32>
      %263 = vector.shape_cast %262 : vector<8xf32> to vector<8x1xf32>
      %cst_129 = arith.constant 3.200000e+01 : f32
      %264 = vector.broadcast %cst_129 : f32 to vector<8x1xf32>
      %265 = arith.divf %263, %264 : vector<8x1xf32>
      %266 = vector.broadcast %258 : vector<8x1xf32> to vector<8x32xf32>
      %267 = arith.subf %250, %266 : vector<8x32xf32>
      %cst_130 = arith.constant 9.99999974E-6 : f32
      %268 = vector.broadcast %cst_130 : f32 to vector<8x1xf32>
      %269 = arith.addf %265, %268 : vector<8x1xf32>
      %270 = math.rsqrt %269 : vector<8x1xf32>
      %271 = vector.broadcast %270 : vector<8x1xf32> to vector<8x32xf32>
      %272 = arith.mulf %267, %271 : vector<8x32xf32>
      %273 = vector.broadcast %252 : vector<1x32xf32> to vector<8x32xf32>
      %274 = arith.mulf %272, %273 : vector<8x32xf32>
      %275 = vector.broadcast %254 : vector<1x32xf32> to vector<8x32xf32>
      %276 = arith.addf %274, %275 : vector<8x32xf32>
      %277 = arith.addf %276, %33 : vector<8x32xf32>
      %c0_131 = arith.constant 0 : index
      %c0_132 = arith.constant 0 : index
      %278 = vector.load %arg26[%c0_131, %c0_132] : memref<32x32xbf16, #tpu.memory_space<vmem>>, vector<32x32xbf16>
      %279 = arith.truncf %277 : vector<8x32xf32> to vector<8x32xbf16>
      %cst_133 = arith.constant dense<0.000000e+00> : vector<8x32xf32>
      %280 = tpu.matmul %279, %278, %cst_133 {dimension_numbers = #tpu.dot_dimension_numbers<[1], [0], [0], [1], [0, 0, 1, 1], [], []>} : vector<8x32xbf16>, vector<32x32xbf16>, vector<8x32xf32> -> vector<8x32xf32>
      %c0_134 = arith.constant 0 : index
      %c0_135 = arith.constant 0 : index
      %281 = vector.load %arg27[%c0_134, %c0_135] : memref<1x32xf32, #tpu.memory_space<vmem>>, vector<1x32xf32>
      %282 = vector.broadcast %281 : vector<1x32xf32> to vector<8x32xf32>
      %283 = arith.addf %280, %282 : vector<8x32xf32>
      %cst_136 = arith.constant 0.000000e+00 : f32
      %284 = vector.broadcast %cst_136 : f32 to vector<8x32xf32>
      %285 = arith.maximumf %283, %284 : vector<8x32xf32>
      %c0_137 = arith.constant 0 : index
      %c0_138 = arith.constant 0 : index
      %286 = vector.load %arg28[%c0_137, %c0_138] : memref<1x32xbf16, #tpu.memory_space<vmem>>, vector<1x32xbf16>
      %287 = arith.truncf %285 : vector<8x32xf32> to vector<8x32xbf16>
      %cst_139 = arith.constant dense<0.000000e+00> : vector<1x8xf32>
      %288 = tpu.matmul %286, %287, %cst_139 {dimension_numbers = #tpu.dot_dimension_numbers<[1], [1], [0], [0], [0, 0, 1, 0], [], []>} : vector<1x32xbf16>, vector<8x32xbf16>, vector<1x8xf32> -> vector<1x8xf32>
      %c0_140 = arith.constant 0 : index
      %c0_141 = arith.constant 0 : index
      %289 = vector.load %arg29[%c0_140, %c0_141] : memref<1x1xf32, #tpu.memory_space<vmem>>, vector<1x1xf32>
      %290 = vector.broadcast %289 : vector<1x1xf32> to vector<1x8xf32>
      %291 = arith.addf %288, %290 : vector<1x8xf32>
      %292 = arith.negf %291 : vector<1x8xf32>
      %293 = math.exp %292 : vector<1x8xf32>
      %cst_142 = arith.constant 1.000000e+00 : f32
      %294 = vector.broadcast %cst_142 : f32 to vector<1x8xf32>
      %295 = arith.addf %294, %293 : vector<1x8xf32>
      %296 = arith.divf %294, %295 : vector<1x8xf32>
      %c0_143 = arith.constant 0 : index
      %c0_144 = arith.constant 0 : index
      %297 = vector.load %arg30[%c0_143, %c0_144] : memref<1x8xf32, #tpu.memory_space<vmem>>, vector<1x8xf32>
      tpu.vector_store %arg30[%c0_143, %c0_144], %296 {strides = array<i32>} : memref<1x8xf32, #tpu.memory_space<vmem>>, vector<1x8xf32>,
    } else {
    }
    return
  }
  func.func @transform_0(%arg0: i32, %arg1: i32) -> (i32, i32) {
    %c0_i32 = arith.constant 0 : i32
    return %arg0, %arg1 : i32, i32
  }
  func.func @transform_1(%arg0: i32, %arg1: i32) -> (i32, i32) {
    %c0_i32 = arith.constant 0 : i32
    %c0_i32_0 = arith.constant 0 : i32
    return %arg0, %c0_i32 : i32, i32
  }
  func.func @transform_2(%arg0: i32, %arg1: i32) -> (i32, i32) {
    %c0_i32 = arith.constant 0 : i32
    %c0_i32_0 = arith.constant 0 : i32
    return %arg1, %c0_i32 : i32, i32
  }
  func.func @transform_3(%arg0: i32, %arg1: i32) -> (i32, i32) {
    %c0_i32 = arith.constant 0 : i32
    %c0_i32_0 = arith.constant 0 : i32
    return %arg0, %c0_i32 : i32, i32
  }
  func.func @transform_4(%arg0: i32, %arg1: i32) -> (i32, i32) {
    %c0_i32 = arith.constant 0 : i32
    %c0_i32_0 = arith.constant 0 : i32
    return %arg1, %c0_i32 : i32, i32
  }
  func.func @transform_5(%arg0: i32, %arg1: i32) -> (i32, i32) {
    %c0_i32 = arith.constant 0 : i32
    %c0_i32_0 = arith.constant 0 : i32
    return %arg0, %c0_i32 : i32, i32
  }
  func.func @transform_6(%arg0: i32, %arg1: i32) -> (i32, i32) {
    %c0_i32 = arith.constant 0 : i32
    %c0_i32_0 = arith.constant 0 : i32
    return %arg0, %c0_i32 : i32, i32
  }
  func.func @transform_7(%arg0: i32, %arg1: i32) -> (i32, i32) {
    %c0_i32 = arith.constant 0 : i32
    %c0_i32_0 = arith.constant 0 : i32
    return %arg0, %c0_i32 : i32, i32
  }
  func.func @transform_8(%arg0: i32, %arg1: i32) -> (i32, i32) {
    %c0_i32 = arith.constant 0 : i32
    %c0_i32_0 = arith.constant 0 : i32
    %c0_i32_1 = arith.constant 0 : i32
    return %c0_i32, %c0_i32_0 : i32, i32
  }
  func.func @transform_9(%arg0: i32, %arg1: i32) -> (i32, i32) {
    %c0_i32 = arith.constant 0 : i32
    %c0_i32_0 = arith.constant 0 : i32
    %c0_i32_1 = arith.constant 0 : i32
    return %c0_i32, %c0_i32_0 : i32, i32
  }
  func.func @transform_10(%arg0: i32, %arg1: i32) -> (i32, i32) {
    %c0_i32 = arith.constant 0 : i32
    %c0_i32_0 = arith.constant 0 : i32
    %c0_i32_1 = arith.constant 0 : i32
    return %c0_i32, %c0_i32_0 : i32, i32
  }
  func.func @transform_11(%arg0: i32, %arg1: i32) -> (i32, i32) {
    %c0_i32 = arith.constant 0 : i32
    %c0_i32_0 = arith.constant 0 : i32
    %c0_i32_1 = arith.constant 0 : i32
    return %c0_i32, %c0_i32_0 : i32, i32
  }
  func.func @transform_12(%arg0: i32, %arg1: i32) -> (i32, i32) {
    %c0_i32 = arith.constant 0 : i32
    %c0_i32_0 = arith.constant 0 : i32
    %c0_i32_1 = arith.constant 0 : i32
    return %c0_i32, %c0_i32_0 : i32, i32
  }
  func.func @transform_13(%arg0: i32, %arg1: i32) -> (i32, i32) {
    %c0_i32 = arith.constant 0 : i32
    %c0_i32_0 = arith.constant 0 : i32
    %c0_i32_1 = arith.constant 0 : i32
    return %c0_i32, %c0_i32_0 : i32, i32
  }
  func.func @transform_14(%arg0: i32, %arg1: i32) -> (i32, i32, i32) {
    %c0_i32 = arith.constant 0 : i32
    %c0_i32_0 = arith.constant 0 : i32
    %c0_i32_1 = arith.constant 0 : i32
    %c0_i32_2 = arith.constant 0 : i32
    return %c0_i32, %c0_i32_0, %c0_i32_1 : i32, i32, i32
  }
  func.func @transform_15(%arg0: i32, %arg1: i32) -> (i32, i32, i32) {
    %c0_i32 = arith.constant 0 : i32
    %c0_i32_0 = arith.constant 0 : i32
    %c0_i32_1 = arith.constant 0 : i32
    %c0_i32_2 = arith.constant 0 : i32
    return %c0_i32, %c0_i32_0, %c0_i32_1 : i32, i32, i32
  }
  func.func @transform_16(%arg0: i32, %arg1: i32) -> (i32, i32, i32) {
    %c0_i32 = arith.constant 0 : i32
    %c0_i32_0 = arith.constant 0 : i32
    %c0_i32_1 = arith.constant 0 : i32
    %c0_i32_2 = arith.constant 0 : i32
    return %c0_i32, %c0_i32_0, %c0_i32_1 : i32, i32, i32
  }
  func.func @transform_17(%arg0: i32, %arg1: i32) -> (i32, i32, i32) {
    %c0_i32 = arith.constant 0 : i32
    %c0_i32_0 = arith.constant 0 : i32
    %c0_i32_1 = arith.constant 0 : i32
    %c0_i32_2 = arith.constant 0 : i32
    return %c0_i32, %c0_i32_0, %c0_i32_1 : i32, i32, i32
  }
  func.func @transform_18(%arg0: i32, %arg1: i32) -> (i32, i32, i32) {
    %c0_i32 = arith.constant 0 : i32
    %c0_i32_0 = arith.constant 0 : i32
    %c0_i32_1 = arith.constant 0 : i32
    %c0_i32_2 = arith.constant 0 : i32
    return %c0_i32, %c0_i32_0, %c0_i32_1 : i32, i32, i32
  }
  func.func @transform_19(%arg0: i32, %arg1: i32) -> (i32, i32, i32) {
    %c0_i32 = arith.constant 0 : i32
    %c0_i32_0 = arith.constant 0 : i32
    %c0_i32_1 = arith.constant 0 : i32
    %c0_i32_2 = arith.constant 0 : i32
    return %c0_i32, %c0_i32_0, %c0_i32_1 : i32, i32, i32
  }
  func.func @transform_20(%arg0: i32, %arg1: i32) -> (i32, i32, i32) {
    %c0_i32 = arith.constant 0 : i32
    %c0_i32_0 = arith.constant 0 : i32
    %c0_i32_1 = arith.constant 0 : i32
    %c0_i32_2 = arith.constant 0 : i32
    return %c0_i32, %c0_i32_0, %c0_i32_1 : i32, i32, i32
  }
  func.func @transform_21(%arg0: i32, %arg1: i32) -> (i32, i32, i32) {
    %c0_i32 = arith.constant 0 : i32
    %c0_i32_0 = arith.constant 0 : i32
    %c0_i32_1 = arith.constant 0 : i32
    %c0_i32_2 = arith.constant 0 : i32
    return %c0_i32, %c0_i32_0, %c0_i32_1 : i32, i32, i32
  }
  func.func @transform_22(%arg0: i32, %arg1: i32) -> (i32, i32, i32) {
    %c0_i32 = arith.constant 0 : i32
    %c0_i32_0 = arith.constant 0 : i32
    %c0_i32_1 = arith.constant 0 : i32
    %c0_i32_2 = arith.constant 0 : i32
    return %c0_i32, %c0_i32_0, %c0_i32_1 : i32, i32, i32
  }
  func.func @transform_23(%arg0: i32, %arg1: i32) -> (i32, i32, i32) {
    %c0_i32 = arith.constant 0 : i32
    %c0_i32_0 = arith.constant 0 : i32
    %c0_i32_1 = arith.constant 0 : i32
    %c0_i32_2 = arith.constant 0 : i32
    return %c0_i32, %c0_i32_0, %c0_i32_1 : i32, i32, i32
  }
  func.func @transform_24(%arg0: i32, %arg1: i32) -> (i32, i32) {
    %c0_i32 = arith.constant 0 : i32
    %c0_i32_0 = arith.constant 0 : i32
    %c0_i32_1 = arith.constant 0 : i32
    return %c0_i32, %c0_i32_0 : i32, i32
  }
  func.func @transform_25(%arg0: i32, %arg1: i32) -> (i32, i32) {
    %c0_i32 = arith.constant 0 : i32
    %c0_i32_0 = arith.constant 0 : i32
    %c0_i32_1 = arith.constant 0 : i32
    return %c0_i32, %c0_i32_0 : i32, i32
  }
  func.func @transform_26(%arg0: i32, %arg1: i32) -> (i32, i32) {
    %c0_i32 = arith.constant 0 : i32
    %c0_i32_0 = arith.constant 0 : i32
    %c0_i32_1 = arith.constant 0 : i32
    return %c0_i32, %c0_i32_0 : i32, i32
  }
  func.func @transform_27(%arg0: i32, %arg1: i32) -> (i32, i32) {
    %c0_i32 = arith.constant 0 : i32
    %c0_i32_0 = arith.constant 0 : i32
    %c0_i32_1 = arith.constant 0 : i32
    return %c0_i32, %c0_i32_0 : i32, i32
  }
  func.func @transform_28(%arg0: i32, %arg1: i32) -> (i32, i32) {
    %c0_i32 = arith.constant 0 : i32
    %c0_i32_0 = arith.constant 0 : i32
    return %c0_i32, %arg0 : i32, i32
  }
}

</mosaic_0001>

<bundles_post_ra>
// kernel: tpu_custom_call.1
= control target key start
LH: loop header
LB: loop body
LE: loop exit
PB: predicated region body
PF: predicated region fallthrough
CT: control target
= control target key end

     0   :  { %s2772_s0 = inlined_call_operand.hbm [shape: bf16[8,8], index: 0, kind: input, shape index: {}]   ;;  %s2773_s1 = inlined_call_operand.hbm [shape: bf16[8,8], index: 1, kind: input, shape index: {}]   ;;  %s2774_s2 = inlined_call_operand.hbm [shape: bf16[8,8], index: 2, kind: input, shape index: {}]   ;;  %s2775_s3 = inlined_call_operand.hbm [shape: f32[8,16], index: 3, kind: input, shape index: {}]   ;;  %s2776_s4 = inlined_call_operand.hbm [shape: f32[8,16], index: 4, kind: input, shape index: {}]   ;;  %s2777_s5 = inlined_call_operand.hbm [shape: f32[8,16], index: 5, kind: input, shape index: {}]   ;;  %s2778_s6 = inlined_call_operand.hbm [shape: f32[8,10], index: 6, kind: input, shape index: {}]   ;;  %s2779_s7 = inlined_call_operand.vmem [shape: f32[8,1], index: 7, kind: input, shape index: {}]   ;;  %s2780_s8 = inlined_call_operand.hbm [shape: bf16[16,32], index: 8, kind: input, shape index: {}]   ;;  %s2781_s9 = inlined_call_operand.vmem [shape: f32[1,32], index: 9, kind: input, shape index: {}]   ;;  %s2782_s10 = inlined_call_operand.vmem [shape: bf16[16,1280], index: 10, kind: input, shape index: {}]   ;;  %s2783_s11 = inlined_call_operand.hbm [shape: f32[1,1280], index: 11, kind: input, shape index: {}]   ;;  %s2784_s12 = inlined_call_operand.hbm [shape: f32[1,32], index: 12, kind: input, shape index: {}]   ;;  %s2785_s13 = inlined_call_operand.hbm [shape: f32[1,32], index: 13, kind: input, shape index: {}]   ;;  %s2786_s14 = inlined_call_operand.vmem [shape: bf16[2,32,32], index: 14, kind: input, shape index: {}]   ;;  %s2787_s15 = inlined_call_operand.vmem [shape: f32[2,1,32], index: 15, kind: input, shape index: {}]   ;;  %s2788_s16 = inlined_call_operand.hbm [shape: bf16[2,32,64], index: 16, kind: input, shape index: {}]   ;;  %s2789_s17 = inlined_call_operand.vmem [shape: f32[2,1,64], index: 17, kind: input, shape index: {}]   ;;  %s2790_s18 = inlined_call_operand.vmem [shape: bf16[2,64,32], index: 18, kind: input, shape index: {}]   ;;  %s2791_s19 = inlined_call_operand.vmem [shape: f32[2,1,32], index: 19, kind: input, shape index: {}]   ;;  %s2792_s20 = inlined_call_operand.vmem [shape: f32[2,1,32], index: 20, kind: input, shape index: {}]   ;;  %s2793_s21 = inlined_call_operand.vmem [shape: f32[2,1,32], index: 21, kind: input, shape index: {}]   ;;  %s2794_s22 = inlined_call_operand.vmem [shape: f32[2,1,32], index: 22, kind: input, shape index: {}]   ;;  %s2795_s23 = inlined_call_operand.vmem [shape: f32[2,1,32], index: 23, kind: input, shape index: {}]   ;;  %s2796_s24 = inlined_call_operand.vmem [shape: bf16[32,32], index: 24, kind: input, shape index: {}]   ;;  %s2797_s25 = inlined_call_operand.vmem [shape: f32[1,32], index: 25, kind: input, shape index: {}]   ;;  %s2798_s26 = inlined_call_operand.vmem [shape: bf16[1,32], index: 26, kind: input, shape index: {}]   ;;  %s2799_s27 = inlined_call_operand.<no memory space> [shape: f32[1,1], index: 27, kind: input, shape index: {}]   ;;  %s2800_s28 = inlined_call_operand.hbm [shape: f32[1,8], index: 28, kind: output, shape index: {}]  }
   0x1   :  { %2813 = sst [smem:[#allocation33_spill]] %s2772_s0  ;;  %v33_v0 = vstv %s2799_s27 }
   0x2   :  { %2814 = sst [smem:[#allocation34_spill]] %s2773_s1  ;;  %34 = vst [vmem:[#allocation3] sm:$0x1] %v33_v0 }
   0x3   :  { %2815 = sst [smem:[#allocation35_spill]] %s2774_s2 }
   0x4   :  { %2816 = sst [smem:[#allocation36_spill]] %s2775_s3 }
   0x5   :  { %2817 = sst [smem:[#allocation37_spill]] %s2776_s4 }
   0x6   :  { %2818 = sst [smem:[#allocation38_spill]] %s2777_s5 }
   0x7   :  { %2819 = sst [smem:[#allocation39_spill]] %s2778_s6 }
   0x8   :  { %2820 = sst [smem:[#allocation40_spill]] %s2779_s7 }
   0x9   :  { %2821 = sst [smem:[#allocation41_spill]] %s2780_s8 }
   0xa   :  { %2822 = sst [smem:[#allocation42_spill]] %s2781_s9 }
   0xb   :  { %2823 = sst [smem:[#allocation43_spill]] %s2782_s10 }
   0xc   :  { %2824 = sst [smem:[#allocation44_spill]] %s2783_s11 }
   0xd   :  { %2825 = sst [smem:[#allocation45_spill]] %s2784_s12 }
   0xe   :  { %2826 = sst [smem:[#allocation46_spill]] %s2798_s26 }
   0xf   :  { %2827 = sst [smem:[#allocation47_spill]] %s2800_s28 }
  0x10   :  { %35 = vsyncpa [#allocation5], 0 }
  0x11   :  { %36 = vsyncpa [#allocation8], 0 }
  0x12   :  { %37 = vsyncpa [#allocation11], 0 }
  0x13   :  { %38 = vsyncpa [#allocation14], 0 }
  0x14   :  { %39 = vsyncpa [#allocation17], 0 }
  0x15   :  { %40 = vsyncpa [#allocation20], 0 }
  0x16   :  { %41 = vsyncpa [#allocation23], 0 }
  0x17   :  { %42 = vsyncpa [#allocation6], 0  ;;  %s2159_s9 = smov [#allocation7]   ;;  %s2160_s3 = smov [#allocation10]  }
  0x18   :  { %s59_s30 = sshll.u32 %s2159_s9, 4  ;;  %s79_s6 = sshll.u32 %s2160_s3, 4  ;;  %s60_s30 = int_to_ptr.vmem [resolvable:$true] %s59_s30  ;;  %s80_s6 = int_to_ptr.vmem [resolvable:$true] %s79_s6 }
  0x19   :  { %s2828_s11 = sld [smem:[#allocation34_spill]] }
  0x1f   :  { %s1857_s29 = scalar_lea.hbm %s2828_s11, 64 }
  0x20   :  { %p1858_p0 = scmp.ne.s32.totalorder %s2828_s11, %s1857_s29  ;;  %p1861_p1 = scmp.lt.u32.totalorder %s1857_s29, %s2828_s11 }
  0x22   :  { %p1863_p2 = pnand %p1861_p1, %p1858_p0 }
  0x24   :  { %1866 = shalt.err (!%p1863_p2)
}
  0x25   :  { %s1867_s1 = scalar_lea.vmem %s60_s30, 64  ;;  %p1872_p4 = scmp.lt.s32.totalorder %s60_s30, %s60_s30 }
  0x26   :  { %p1868_p3 = scmp.ne.s32.totalorder %s60_s30, %s1867_s1  ;;  %p1873_p5 = scmp.lt.s32.totalorder %s1867_s1, %s1867_s1 }
  0x28   :  { %p1874_p6 = por %p1873_p5, %p1872_p4 }
  0x2a   :  { %p1875_p7 = pnand %p1874_p6, %p1868_p3 }
  0x2c   :  { %1878 = shalt.err (!%p1875_p7)
}
  0x2d   :  { %62 = dma.hbm_to_vmem [thread:$0]  %s2828_s11, 64, %s60_s30, [#allocation8]  }
  0x2e   :  { %s2829_s3 = sld [smem:[#allocation36_spill]] }
  0x34   :  { %s1879_s10 = scalar_lea.hbm %s2829_s3, 128 }
  0x35   :  { %p1880_p8 = scmp.ne.s32.totalorder %s2829_s3, %s1879_s10  ;;  %p1883_p9 = scmp.lt.u32.totalorder %s1879_s10, %s2829_s3 }
  0x37   :  { %p1885_p10 = pnand %p1883_p9, %p1880_p8 }
  0x39   :  { %1888 = shalt.err (!%p1885_p10)
}
  0x3a   :  { %s1889_s7 = scalar_lea.vmem %s80_s6, 128  ;;  %p1894_p12 = scmp.lt.s32.totalorder %s80_s6, %s80_s6 }
  0x3b   :  { %p1890_p11 = scmp.ne.s32.totalorder %s80_s6, %s1889_s7  ;;  %p1895_p13 = scmp.lt.s32.totalorder %s1889_s7, %s1889_s7 }
  0x3d   :  { %p1896_p0 = por %p1895_p13, %p1894_p12 }
  0x3f   :  { %p1897_p1 = pnand %p1896_p0, %p1890_p11 }
  0x41   :  { %1900 = shalt.err (!%p1897_p1)
}
  0x42   :  { %82 = dma.hbm_to_vmem [thread:$0]  %s2829_s3, 128, %s80_s6, [#allocation11]  }
  0x43   :  { %s2161_s12 = smov [#allocation13]   ;;  %s2162_s4 = smov [#allocation16]  }
  0x44   :  { %s99_s1 = sshll.u32 %s2161_s12, 4  ;;  %s120_s8 = sshll.u32 %s2162_s4, 4  ;;  %s100_s1 = int_to_ptr.vmem [resolvable:$true] %s99_s1  ;;  %s2358_s8 = int_to_ptr.vmem [resolvable:$true] %s120_s8 }
  0x45   :  { %s2830_s10 = sld [smem:[#allocation38_spill]] }
  0x4b   :  { %s1901_s0 = scalar_lea.hbm %s2830_s10, 128 }
  0x4c   :  { %p1902_p2 = scmp.ne.s32.totalorder %s2830_s10, %s1901_s0  ;;  %p1905_p3 = scmp.lt.u32.totalorder %s1901_s0, %s2830_s10 }
  0x4e   :  { %p1907_p4 = pnand %p1905_p3, %p1902_p2 }
  0x50   :  { %1910 = shalt.err (!%p1907_p4)
}
  0x51   :  { %s1911_s6 = scalar_lea.vmem %s100_s1, 128  ;;  %p1916_p6 = scmp.lt.s32.totalorder %s100_s1, %s100_s1 }
  0x52   :  { %p1912_p5 = scmp.ne.s32.totalorder %s100_s1, %s1911_s6  ;;  %p1917_p7 = scmp.lt.s32.totalorder %s1911_s6, %s1911_s6 }
  0x54   :  { %p1918_p8 = por %p1917_p7, %p1916_p6 }
  0x56   :  { %p1919_p9 = pnand %p1918_p8, %p1912_p5 }
  0x58   :  { %1922 = shalt.err (!%p1919_p9)
}
  0x59   :  { %102 = dma.hbm_to_vmem [thread:$0]  %s2830_s10, 128, %s100_s1, [#allocation14]  }
  0x5a   :  { %s2831_s4 = sld [smem:[#allocation41_spill]] }
  0x60   :  { %s1923_s5 = scalar_lea.hbm %s2831_s4, 128 }
  0x61   :  { %p1924_p10 = scmp.ne.s32.totalorder %s2831_s4, %s1923_s5  ;;  %p1927_p11 = scmp.lt.u32.totalorder %s1923_s5, %s2831_s4 }
  0x63   :  { %p1929_p12 = pnand %p1927_p11, %p1924_p10 }
  0x65   :  { %1932 = shalt.err (!%p1929_p12)
}
  0x66   :  { %s1933_s2 = scalar_lea.vmem %s2358_s8, 128  ;;  %p1938_p0 = scmp.lt.s32.totalorder %s2358_s8, %s2358_s8 }
  0x67   :  { %p1934_p13 = scmp.ne.s32.totalorder %s2358_s8, %s1933_s2  ;;  %p1939_p1 = scmp.lt.s32.totalorder %s1933_s2, %s1933_s2 }
  0x69   :  { %p1940_p2 = por %p1939_p1, %p1938_p0 }
  0x6b   :  { %p1941_p3 = pnand %p1940_p2, %p1934_p13 }
  0x6d   :  { %1944 = shalt.err (!%p1941_p3)
}
  0x6e   :  { %s2163_s1 = smov 64   ;;  %s2164_s10 = smov 4  }
  0x6f   :  { %126 = dma.hbm_to_vmem [thread:$0]  %s2831_s4, 128, %s2358_s8, [#allocation17], %s2163_s1, %s2163_s1, %s2164_s10  }
  0x70   :  { %s2165_s3 = smov [#allocation19]   ;;  %s2166_s11 = smov [#allocation4]  }
  0x71   :  { %s147_s30 = sshll.u32 %s2165_s3, 4  ;;  %s49_s12 = sshll.u32 %s2166_s11, 4  ;;  %s148_s30 = int_to_ptr.vmem [resolvable:$true] %s147_s30  ;;  %s50_s12 = int_to_ptr.vmem [resolvable:$true] %s49_s12 }
  0x72   :  { %s2832_s27 = sld [smem:[#allocation45_spill]] }
  0x78   :  { %s1945_s0 = scalar_lea.hbm %s2832_s27, 16 }
  0x79   :  { %p1946_p4 = scmp.ne.s32.totalorder %s2832_s27, %s1945_s0  ;;  %p1949_p5 = scmp.lt.u32.totalorder %s1945_s0, %s2832_s27 }
  0x7b   :  { %p1951_p6 = pnand %p1949_p5, %p1946_p4 }
  0x7d   :  { %1954 = shalt.err (!%p1951_p6)
}
  0x7e   :  { %s1955_s8 = scalar_lea.vmem %s148_s30, 16  ;;  %s1959_s4 = scalar_lea.vmem %s148_s30, 32 }
  0x7f   :  { %p1956_p7 = scmp.ne.s32.totalorder %s148_s30, %s1955_s8  ;;  %p1960_p8 = scmp.lt.s32.totalorder %s148_s30, %s148_s30 }
  0x80   :  { %p1961_p9 = scmp.lt.s32.totalorder %s1959_s4, %s1955_s8 }
  0x82   :  { %p1962_p10 = por %p1961_p9, %p1960_p8 }
  0x84   :  { %p1963_p11 = pnand %p1962_p10, %p1956_p7 }
  0x86   :  { %1966 = shalt.err (!%p1963_p11)
}
  0x87   :  { %150 = dma.hbm_to_vmem [thread:$0]  %s2832_s27, 16, %s148_s30, [#allocation20]  }
  0x88   :  { %s2833_s5 = sld [smem:[#allocation33_spill]] }
  0x8e   :  { %s1967_s9 = scalar_lea.hbm %s2833_s5, 64 }
  0x8f   :  { %p1968_p12 = scmp.ne.s32.totalorder %s2833_s5, %s1967_s9  ;;  %p1971_p13 = scmp.lt.u32.totalorder %s1967_s9, %s2833_s5 }
  0x91   :  { %p1973_p0 = pnand %p1971_p13, %p1968_p12 }
  0x93   :  { %1976 = shalt.err (!%p1973_p0)
}
  0x94   :  { %s1977_s2 = scalar_lea.vmem %s50_s12, 64  ;;  %p1982_p2 = scmp.lt.s32.totalorder %s50_s12, %s50_s12 }
  0x95   :  { %p1978_p1 = scmp.ne.s32.totalorder %s50_s12, %s1977_s2  ;;  %p1983_p3 = scmp.lt.s32.totalorder %s1977_s2, %s1977_s2 }
  0x97   :  { %p1984_p4 = por %p1983_p3, %p1982_p2 }
  0x99   :  { %p1985_p5 = pnand %p1984_p4, %p1978_p1 }
  0x9b   :  { %1988 = shalt.err (!%p1985_p5)
}
  0x9c   :  { %52 = dma.hbm_to_vmem [thread:$0]  %s2833_s5, 64, %s50_s12, [#allocation5]  }
  0x9d   :  { %s2167_s8 = smov [#allocation9]   ;;  %s2168_s7 = smov [#allocation12]  }
  0x9e   :  { %s69_s4 = sshll.u32 %s2167_s8, 4  ;;  %s89_s6 = sshll.u32 %s2168_s7, 4  ;;  %s70_s4 = int_to_ptr.vmem [resolvable:$true] %s69_s4  ;;  %s90_s6 = int_to_ptr.vmem [resolvable:$true] %s89_s6 }
  0x9f   :  { %s2834_s9 = sld [smem:[#allocation35_spill]] }
  0xa5   :  { %s1989_s26 = scalar_lea.hbm %s2834_s9, 64 }
  0xa6   :  { %p1990_p6 = scmp.ne.s32.totalorder %s2834_s9, %s1989_s26  ;;  %p1993_p7 = scmp.lt.u32.totalorder %s1989_s26, %s2834_s9 }
  0xa8   :  { %p1995_p8 = pnand %p1993_p7, %p1990_p6 }
  0xaa   :  { %1998 = shalt.err (!%p1995_p8)
}
  0xab   :  { %s1999_s12 = scalar_lea.vmem %s70_s4, 64  ;;  %p2004_p10 = scmp.lt.s32.totalorder %s70_s4, %s70_s4 }
  0xac   :  { %p2000_p9 = scmp.ne.s32.totalorder %s70_s4, %s1999_s12  ;;  %p2005_p11 = scmp.lt.s32.totalorder %s1999_s12, %s1999_s12 }
  0xae   :  { %p2006_p12 = por %p2005_p11, %p2004_p10 }
  0xb0   :  { %p2007_p13 = pnand %p2006_p12, %p2000_p9 }
  0xb2   :  { %2010 = shalt.err (!%p2007_p13)
}
  0xb3   :  { %72 = dma.hbm_to_vmem [thread:$0]  %s2834_s9, 64, %s70_s4, [#allocation8]  }
  0xb4   :  { %s2835_s7 = sld [smem:[#allocation37_spill]] }
  0xba   :  { %s2011_s3 = scalar_lea.hbm %s2835_s7, 128 }
  0xbb   :  { %p2012_p0 = scmp.ne.s32.totalorder %s2835_s7, %s2011_s3  ;;  %p2015_p1 = scmp.lt.u32.totalorder %s2011_s3, %s2835_s7 }
  0xbd   :  { %p2017_p2 = pnand %p2015_p1, %p2012_p0 }
  0xbf   :  { %2020 = shalt.err (!%p2017_p2)
}
  0xc0   :  { %s2021_s29 = scalar_lea.vmem %s90_s6, 128  ;;  %p2026_p4 = scmp.lt.s32.totalorder %s90_s6, %s90_s6 }
  0xc1   :  { %p2022_p3 = scmp.ne.s32.totalorder %s90_s6, %s2021_s29  ;;  %p2027_p5 = scmp.lt.s32.totalorder %s2021_s29, %s2021_s29 }
  0xc3   :  { %p2028_p6 = por %p2027_p5, %p2026_p4 }
  0xc5   :  { %p2029_p7 = pnand %p2028_p6, %p2022_p3 }
  0xc7   :  { %2032 = shalt.err (!%p2029_p7)
}
  0xc8   :  { %92 = dma.hbm_to_vmem [thread:$0]  %s2835_s7, 128, %s90_s6, [#allocation11]  }
  0xc9   :  { %s2169_s2 = smov [#allocation15]   ;;  %s2170_s5 = smov [#allocation18]  }
  0xca   :  { %s109_s12 = sshll.u32 %s2169_s2, 4  ;;  %s137_s30 = sshll.u32 %s2170_s5, 4  ;;  %s110_s12 = int_to_ptr.vmem [resolvable:$true] %s109_s12  ;;  %s138_s30 = int_to_ptr.vmem [resolvable:$true] %s137_s30 }
  0xcb   :  { %s2836_s3 = sld [smem:[#allocation39_spill]] }
  0xd1   :  { %s2033_s11 = scalar_lea.hbm %s2836_s3, 128 }
  0xd2   :  { %p2034_p8 = scmp.ne.s32.totalorder %s2836_s3, %s2033_s11  ;;  %p2037_p9 = scmp.lt.u32.totalorder %s2033_s11, %s2836_s3 }
  0xd4   :  { %p2039_p10 = pnand %p2037_p9, %p2034_p8 }
  0xd6   :  { %2042 = shalt.err (!%p2039_p10)
}
  0xd7   :  { %s2043_s6 = scalar_lea.vmem %s110_s12, 128  ;;  %p2048_p12 = scmp.lt.s32.totalorder %s110_s12, %s110_s12 }
  0xd8   :  { %p2044_p11 = scmp.ne.s32.totalorder %s110_s12, %s2043_s6  ;;  %p2049_p13 = scmp.lt.s32.totalorder %s2043_s6, %s2043_s6 }
  0xda   :  { %p2050_p0 = por %p2049_p13, %p2048_p12 }
  0xdc   :  { %p2051_p1 = pnand %p2050_p0, %p2044_p11 }
  0xde   :  { %2054 = shalt.err (!%p2051_p1)
}
  0xdf   :  { %112 = dma.hbm_to_vmem [thread:$0]  %s2836_s3, 128, %s110_s12, [#allocation14]  }
  0xe0   :  { %s2837_s5 = sld [smem:[#allocation44_spill]] }
  0xe6   :  { %s2055_s27 = scalar_lea.hbm %s2837_s5, 160 }
  0xe7   :  { %p2056_p2 = scmp.ne.s32.totalorder %s2837_s5, %s2055_s27  ;;  %p2059_p3 = scmp.lt.u32.totalorder %s2055_s27, %s2837_s5 }
  0xe9   :  { %p2061_p4 = pnand %p2059_p3, %p2056_p2 }
  0xeb   :  { %2064 = shalt.err (!%p2061_p4)
}
  0xec   :  { %s2065_s0 = scalar_lea.vmem %s138_s30, 160  ;;  %p2070_p6 = scmp.lt.s32.totalorder %s138_s30, %s138_s30 }
  0xed   :  { %p2066_p5 = scmp.ne.s32.totalorder %s138_s30, %s2065_s0  ;;  %p2071_p7 = scmp.lt.s32.totalorder %s2065_s0, %s2065_s0 }
  0xef   :  { %p2072_p8 = por %p2071_p7, %p2070_p6 }
  0xf1   :  { %p2073_p9 = pnand %p2072_p8, %p2066_p5 }
  0xf3   :  { %2076 = shalt.err (!%p2073_p9)
}
  0xf4   :  { %140 = dma.hbm_to_vmem [thread:$0]  %s2837_s5, 160, %s138_s30, [#allocation17]  }
  0xf5   :  { %s2171_s29 = smov [#allocation21]   ;;  %s2172_s7 = smov [#allocation22]  }
  0xf6   :  { %s157_s6 = sshll.u32 %s2171_s29, 4  ;;  %s170_s4 = sshll.u32 %s2172_s7, 4  ;;  %s158_s6 = int_to_ptr.vmem [resolvable:$true] %s157_s6  ;;  %s2464_s4 = int_to_ptr.vmem [resolvable:$true] %s170_s4 }
  0xf7   :  { %s2077_s27 = scalar_lea.hbm %s2785_s13, 16 }
  0xf8   :  { %p2078_p10 = scmp.ne.s32.totalorder %s2785_s13, %s2077_s27  ;;  %p2081_p11 = scmp.lt.u32.totalorder %s2077_s27, %s2785_s13 }
  0xfa   :  { %p2083_p12 = pnand %p2081_p11, %p2078_p10 }
  0xfc   :  { %2086 = shalt.err (!%p2083_p12)
}
  0xfd   :  { %s2087_s30 = scalar_lea.vmem %s158_s6, 16  ;;  %s2091_s5 = scalar_lea.vmem %s158_s6, 32 }
  0xfe   :  { %p2088_p13 = scmp.ne.s32.totalorder %s158_s6, %s2087_s30  ;;  %p2092_p0 = scmp.lt.s32.totalorder %s158_s6, %s158_s6 }
  0xff   :  { %p2093_p1 = scmp.lt.s32.totalorder %s2091_s5, %s2087_s30 }
 0x101   :  { %p2094_p2 = por %p2093_p1, %p2092_p0 }
 0x103   :  { %p2095_p3 = pnand %p2094_p2, %p2088_p13 }
 0x105   :  { %2098 = shalt.err (!%p2095_p3)
}
 0x106   :  { %160 = dma.hbm_to_vmem [thread:$0]  %s2785_s13, 16, %s158_s6, [#allocation20]  }
 0x107   :  { %s2099_s7 = scalar_lea.hbm %s2788_s16, 512 }
 0x108   :  { %p2100_p4 = scmp.ne.s32.totalorder %s2788_s16, %s2099_s7  ;;  %p2103_p5 = scmp.lt.u32.totalorder %s2099_s7, %s2788_s16 }
 0x10a   :  { %p2105_p6 = pnand %p2103_p5, %p2100_p4 }
 0x10c   :  { %2108 = shalt.err (!%p2105_p6)
}
 0x10d   :  { %s2109_s28 = scalar_lea.vmem %s2464_s4, 512  ;;  %p2114_p8 = scmp.lt.s32.totalorder %s2464_s4, %s2464_s4 }
 0x10e   :  { %p2110_p7 = scmp.ne.s32.totalorder %s2464_s4, %s2109_s28  ;;  %p2115_p9 = scmp.lt.s32.totalorder %s2109_s28, %s2109_s28 }
 0x110   :  { %p2116_p10 = por %p2115_p9, %p2114_p8 }
 0x112   :  { %p2117_p11 = pnand %p2116_p10, %p2110_p7 }
 0x114   :  { %2120 = shalt.err (!%p2117_p11)
}
 0x115   :  { %176 = dma.hbm_to_vmem [thread:$0]  %s2788_s16, 512, %s2464_s4, [#allocation23], %s2163_s1, %s2163_s1, %s2164_s10  }
 0x116   :  { %2143 = dma.done.wait [#allocation5], 64  }
 0x117   :  { %2144 = vsyncadd [#allocation5], 4294967232 }
 0x118   :  { %2145 = dma.done.wait [#allocation8], 128  }
 0x119   :  { %2146 = vsyncadd [#allocation8], 4294967168 }
 0x11a   :  { %2147 = dma.done.wait [#allocation11], 256  }
 0x11b   :  { %2148 = vsyncadd [#allocation11], 4294967040 }
 0x11c   :  { %2149 = dma.done.wait [#allocation14], 256  }
 0x11d   :  { %2150 = vsyncadd [#allocation14], 4294967040 }
 0x11e   :  { %2151 = dma.done.wait [#allocation17], 288  }
 0x11f   :  { %2152 = vsyncadd [#allocation17], 4294967008 }
 0x120   :  { %2153 = dma.done.wait [#allocation20], 32  }
 0x121   :  { %2154 = vsyncadd [#allocation20], 4294967264 }
 0x122   :  { %2155 = dma.done.wait [#allocation23], 512  }
 0x123   :  { %2156 = vsyncadd [#allocation23], 4294966784  ;;  %v2173_v1 = vmov 0.0   ;;  %vm2174_vm0 = vmmov 0   ;;  %v2175_v2 = vmov 0   ;;  %v2176_v3 = vmov 1  }
 0x124   :  { %1680 = vmatprep.subr.bf16.mxu0 %v2173_v1  ;;  %1682 = vmatprep.mubr.msk.bf16.mxu0 %vm2174_vm0, %v2173_v1  ;;  %vm247_vm1 = vcmask 64512   ;;  %v246_v4 = vld [vmem:[#allocation9] sm:$0xf]  ;;  %s2838_s10 = sld [smem:[#allocation43_spill]]  ;;  %s2839_s26 = sld [smem:[#allocation40_spill]]  ;;  %vm243_vm2 = vcmask 130048   ;;  %v440_v18 = vlaneseq }
 0x125   :  { %1795 = vset.pattern.permute.xlu0 %v2175_v2  ;;  %1796 = vset.pattern.permute.xlu1 %v2176_v3  ;;  %v252_v5 = vsel %vm247_vm1, %v246_v4, 0  ;;  %v2512_v8 = vld [vmem:[#allocation15] sm:$0xff]  ;;  %v364_v11 = vld [vmem:[#allocation10] sm:$0xff]  ;;  %v308_v13 = vld [vmem:[#allocation12] sm:$0xff]  ;;  %vm314_vm3 = vcmask 1043456   ;;  %v2177_v55 = vmov 2  }
 0x126   :  { %1686 = vmatprep.subr.bf16.mxu1 %v2173_v1  ;;  %1688 = vmatprep.mubr.msk.bf16.mxu1 %vm2174_vm0, %v2173_v1  ;;  %v245_v9 = vld [vmem:[#allocation7] sm:$0xf]  ;;  %v2521_v12 = vpack.c.bf16 %v364_v11, %v364_v11  ;;  %v310_v14 = vpack.c.bf16 %v308_v13, %v308_v13  ;;  %v240_v16 = vld [vmem:[#allocation13] sm:$0xff]  ;;  %v2528_v19 = vshrl.u32 %v440_v18, 7  ;;  %v2533_v26 = vld [vmem:[#allocation18] sm:$0xff]  ;;  %v2178_v56 = vmov 3  }
 0x127   :  { %1681 = vmatpush3.bf16.xpose.msra.mxu0 %v252_v5  ;;  %757 = vperm.xlu1 %1796, %v2512_v8   ;;  %v242_v17 = vmul.f32 %v364_v11, %v240_v16  ;;  %v305_v39 = vld [vmem:[#allocation4] sm:$0xf]  ;;  %v1810_v49 = vld [vmem:[#allocation16] sm:$0xff]   ;;  %v2179_v57 = vmov 4   ;;  %v2180_v58 = vmov 6   ;;  %v2181_v59 = vmov 5  }
 0x128   :  { %v316_v15 = vsel %vm314_vm3, %v310_v14, 0  ;;  %v2531_v24 = vsub.s32 0, %v2528_v19  ;;  %v446_v27 = vsub.s32 1, %v2528_v19  ;;  %v306_v43 = vunpack.c.l.bf16 %v305_v39  ;;  %s2840_s9 = sld [smem:[#allocation42_spill]]  ;;  %s2841_s27 = sld [smem:[#allocation46_spill]] }
 0x129   :  { %1687 = vmatpush3.bf16.msra.mxu1 %v316_v15  ;;  %244 = vst.msk [vmem:[#allocation2] sm:$0xff] %vm243_vm2, %v242_v17  ;;  %v2182_v60 = vmov 9   ;;  %v2183_v61 = vmov 7   ;;  %v2184_v62 = vmov 8   ;;  %vm812_vm4 = vcmask 261120  }
 0x12a   :  { %v1809_v6 = vld [vmem:[%s2838_s10 + $0x4] ss:$40 sps:$4 sm:$0xff]   ;;  %v1807_v10 = vld [vmem:[%s2838_s10] ss:$40 sps:$4 sm:$0xff]   ;;  %1692 = vmatprep.subr.bf16.mxu1 %v2173_v1  ;;  %v443_v30 = vrot.slane %v2533_v26, %v2531_v24  ;;  %v447_v31 = vrot.slane %v2533_v26, %v446_v27  ;;  %v1816_v50 = vld [vmem:[%s2838_s10 + $0x14] ss:$40 sps:$4 sm:$0xff]  }
 0x12b   :  { %v294_v7 = vld [vmem:[%s2839_s26] sm:$0xff]  ;;  %543 = vmatprep.subr.bf16.mxu0 %v1809_v6  ;;  %v1813_v51 = vld [vmem:[%s2838_s10 + $0xc] ss:$40 sps:$4 sm:$0xff]   ;;  %v1814_v52 = vld [vmem:[%s2838_s10 + $0x10] ss:$40 sps:$4 sm:$0xff]   ;;  %1797 = vset.pattern.permute.xlu1 %v2177_v55  ;;  %vm1046_vm5 = vcmask 523264  }
 0x12c   :  { %297 = vperm.xlu0 %1795, %v294_v7   ;;  %v1820_v53 = vld [vmem:[%s2838_s10 + $0x20] ss:$40 sps:$4 sm:$0xff]   ;;  %v1822_v54 = vld [vmem:[%s2838_s10 + $0x24] ss:$40 sps:$4 sm:$0xff]   ;;  %763 = vperm.xlu1 %1797, %v2512_v8   ;;  %vm1541_vm6 = vcmask 57344  }
 0x12d   :  { %v1817_v11 = vld [vmem:[%s2838_s10 + $0x18] ss:$40 sps:$4 sm:$0xff]  }
 0x12e   :  { %1683 = vmatmul.mubr.msk.bf16.vlgmr.msra.gmra.mrb[0].mxu0 %vm247_vm1, %v245_v9  ;;  %v1811_v9 = vld [vmem:[%s2838_s10 + $0x8] ss:$40 sps:$4 sm:$0xff]  }
 0x12f   :  { %544 = vmatpush1.bf16.msra.mxu0 %v1807_v10  ;;  %575 = vmatprep.mubr.bf16.mxu0 %v2175_v2 }
 0x130   :  { %751 = vperm.xlu0 %1795, %v2512_v8   ;;  %625 = vmatprep.subr.bf16.mxu0 %v1816_v50  ;;  %v304_v63 = vld [vmem:[#allocation2] sm:$0xff] }
 0x131   :  { %1799 = vset.pattern.permute.xlu1 %v2179_v57 }
 0x132   :  { %775 = vperm.xlu1 %1799, %v2512_v8  }
 0x134   :  { %1798 = vset.pattern.permute.xlu0 %v2178_v56 }
 0x135   :  { %769 = vperm.xlu0 %1798, %v2512_v8  }
 0x136   :  { %1579 = vmatmul.mubr.msk.bf16.vlgmr.msra.gmra.mrb[4].mxu0 %vm243_vm2, %v2521_v12  ;;  %1800 = vset.pattern.permute.xlu1 %v2181_v59 }
 0x137   :  { %657 = vmatprep.mubr.bf16.mxu0 %v2175_v2  ;;  %626 = vmatpush1.bf16.msra.mxu0 %v1814_v52 }
 0x138   :  { %707 = vmatprep.subr.bf16.mxu0 %v1822_v54  ;;  %781 = vperm.xlu1 %1800, %v2512_v8  }
 0x139   :  { %1801 = vset.pattern.permute.xlu0 %v2180_v58 }
 0x13a   :  { %787 = vperm.xlu0 %1801, %v2512_v8  }
 0x13c   :  { %1802 = vset.pattern.permute.xlu1 %v2183_v61 }
 0x13d   :  { %793 = vperm.xlu1 %1802, %v2512_v8  }
 0x13e   :  { %1581 = vmatmul.mubr.msk.bf16.vlgmr.msra.gmra.mrb[8].mxu0 %vm243_vm2, %v2521_v12  ;;  %1804 = vset.pattern.permute.xlu0 %v2182_v60 }
 0x13f   :  { %739 = vmatprep.mubr.bf16.mxu0 %v2175_v2  ;;  %708 = vmatpush1.bf16.msra.mxu0 %v1820_v53 }
 0x140   :  { %1706 = vmatprep.subr.bf16.mxu0 %v2173_v1  ;;  %805 = vperm.xlu0 %1804, %v2512_v8  }
 0x141   :  { %1803 = vset.pattern.permute.xlu1 %v2184_v62 }
 0x142   :  { %799 = vperm.xlu1 %1803, %v2512_v8   ;;  %v1819_v8 = vld [vmem:[%s2838_s10 + $0x1c] ss:$40 sps:$4 sm:$0xff]  }
 0x144   :  { %1806 = vset.pattern.permute.xlu0 %v2175_v2 }
 0x146   :  { %1583 = vmatmul.mubr.msk.bf16.vlgmr.msra.gmra.mrb[12].mxu0 %vm243_vm2, %v2521_v12  ;;  %1805 = vset.pattern.permute.xlu1 %v2175_v2 }
 0x147   :  { %1710 = vmatprep.mubr.msk.bf16.mxu0 %vm2174_vm0, %v2173_v1 }
 0x1a6   :  { %v758_v35 = vpop.permute.xlu1 %757 }
 0x1ab   :  { %v298_v20 = vpop.permute.xlu0 %297 }
 0x1af   :  { %v752_v36 = vpop.permute.xlu0 %751 }
 0x201   :  { %v288_v21 = vpop.f32.mrb[0].mxu0 }
 0x202   :  { %v300_v22 = vsub.f32 %v298_v20, %v288_v21  ;;  %v1684_v23 = vpop.f32.mrb[1].mxu0 }
 0x203   :  { %v291_v25 = vpop.f32.mrb[2].mxu0 }
 0x204   :  { %v301_v28 = vadd.f32 1e-08, %v300_v22  ;;  %v1685_v29 = vpop.f32.mrb[3].mxu0  ;;  %v764_v22 = vpop.permute.xlu1 %763 }
 0x206   :  { %1841 = vrcp.f32 %v301_v28  ;;  %v450_v28 = vsub.s32 2, %v2528_v19 }
 0x209   :  { %v577_v32 = vpop.f32.mrb[4].mxu0 }
 0x20a   :  { %v578_v33 = vadd.f32 %v577_v32, %v443_v30  ;;  %v579_v34 = vpop.f32.mrb[5].mxu0  ;;  %v462_v32 = vsub.s32 5, %v2528_v19 }
 0x20b   :  { %v580_v37 = vadd.f32 %v579_v34, %v447_v31  ;;  %v581_v38 = vpop.f32.mrb[6].mxu0  ;;  %v458_v31 = vsub.s32 4, %v2528_v19 }
 0x20c   :  { %v754_v40 = vmul.f32 %v752_v36, %v578_v33  ;;  %v582_v41 = vpop.f32.mrb[7].mxu0  ;;  %v451_v33 = vrot.slane %v2533_v26, %v450_v28  ;;  %v463_v38 = vrot.slane %v2533_v26, %v462_v32 }
 0x20d   :  { %v760_v42 = vmul.f32 %v758_v35, %v580_v37  ;;  %v459_v36 = vrot.slane %v2533_v26, %v458_v31  ;;  %v770_v41 = vpop.permute.xlu0 %769 }
 0x20f   :  { %v2541_v44 = vadd.f32 %v760_v42, %v754_v40  ;;  %v466_v42 = vsub.s32 6, %v2528_v19 }
 0x210   :  { %v1842_v45 = vpop.eup %1841 }
 0x211   :  { %v303_v46 = vmul.f32 %v1842_v45, %v288_v21  ;;  %v659_v13 = vpop.f32.mrb[8].mxu0  ;;  %v467_v55 = vrot.slane %v2533_v26, %v466_v42  ;;  %v788_v62 = vpop.permute.xlu0 %787 }
 0x212   :  { %v661_v14 = vpop.f32.mrb[9].mxu0 }
 0x213   :  { %v307_v47 = vadd.f32 %v306_v43, %v303_v46  ;;  %v663_v15 = vpop.f32.mrb[10].mxu0  ;;  %v470_v46 = vsub.s32 7, %v2528_v19 }
 0x214   :  { %v664_v16 = vpop.f32.mrb[11].mxu0 }
 0x215   :  { %v309_v48 = vpack.c.bf16 %v307_v47, %v307_v47  ;;  %v437_v47 = vld [vmem:[#allocation18 + $0x8] sm:$0x3]  ;;  %v471_v57 = vrot.slane %v2533_v26, %v470_v46  ;;  %v806_v15 = vpop.permute.xlu0 %805 }
 0x216   :  { %v475_v56 = vrot.slane %v437_v47, %v2531_v24 }
 0x217   :  { %1689 = vmatmul.mubr.msk.bf16.vlgmr.msra.gmra.mrb[0].mxu1 %vm247_vm1, %v309_v48  ;;  %v660_v48 = vadd.f32 %v659_v13, %v459_v36 }
 0x218   :  { %1694 = vmatprep.mubr.msk.bf16.mxu1 %vm2174_vm0, %v2173_v1  ;;  %1693 = vmatpush3.bf16.msra.mxu1 %v1810_v49 }
 0x219   :  { %584 = vmatprep.subr.bf16.mxu1 %v1813_v51  ;;  %v741_v17 = vpop.f32.mrb[12].mxu0  ;;  %v662_v51 = vadd.f32 %v661_v14, %v463_v38 }
 0x21a   :  { %v743_v18 = vpop.f32.mrb[13].mxu0 }
 0x21b   :  { %v745_v20 = vpop.f32.mrb[14].mxu0 }
 0x21c   :  { %v746_v21 = vpop.f32.mrb[15].mxu0 }
 0x2ea   :  { %v352_v0 = vpop.f32.mrb[0].mxu1 }
 0x2eb   :  { %v358_v3 = vadd.f32 %v352_v0, %v304_v63  ;;  %v1690_v4 = vpop.f32.mrb[1].mxu1 }
 0x2ec   :  { %v355_v5 = vpop.f32.mrb[2].mxu1  ;;  %v742_v4 = vadd.f32 %v741_v17, %v475_v56  ;;  %v1828_v56 = vld [vmem:[%s2790_s18 + $0x8] sm:$0xff]  }
 0x2ed   :  { %360 = vst.msk [vmem:[#allocation2] sm:$0xff] %vm243_vm2, %v358_v3  ;;  %v1691_v6 = vpop.f32.mrb[3].mxu1  ;;  %v479_v5 = vrot.slane %v437_v47, %v446_v27 }
 0x2ef   :  { %v744_v13 = vadd.f32 %v743_v18, %v479_v5  ;;  %v1823_v18 = vld [vmem:[%s2786_s14] sm:$0xff]   ;;  %v1829_v5 = vld [vmem:[%s2790_s18 + $0x10] sm:$0xff]  }
 0x2f1   :  { %v808_v21 = vmul.f32 %v806_v15, %v744_v13 }
 0x2f4   :  { %v365_v7 = vld [vmem:[#allocation2] sm:$0xff] }
 0x2f5   :  { %v368_v10 = vpack.c.bf16 %v365_v7, %v365_v7 }
 0x2f7   :  { %1695 = vmatmul.mubr.msk.bf16.vlgmr.msra.gmra.mrb[4].mxu1 %vm243_vm2, %v368_v10 }
 0x2f8   :  { %585 = vmatpush1.bf16.msra.mxu1 %v1811_v9  ;;  %616 = vmatprep.mubr.bf16.mxu1 %v2175_v2 }
 0x2f9   :  { %666 = vmatprep.subr.bf16.mxu1 %v1819_v8 }
 0x2ff   :  { %1580 = vmatmul.mubr.msk.bf16.vlgmr.msra.gmra.mrb[8].mxu1 %vm243_vm2, %v2521_v12 }
 0x300   :  { %667 = vmatpush1.bf16.msra.mxu1 %v1817_v11  ;;  %698 = vmatprep.mubr.bf16.mxu1 %v2175_v2  ;;  %v776_v2 = vpop.permute.xlu1 %775 }
 0x301   :  { %1698 = vmatprep.subr.bf16.mxu1 %v2173_v1  ;;  %v778_v58 = vmul.f32 %v776_v2, %v660_v48 }
 0x304   :  { %v782_v35 = vpop.permute.xlu1 %781 }
 0x305   :  { %v784_v60 = vmul.f32 %v782_v35, %v662_v51  ;;  %v1585_v35 = vld [vmem:[#allocation21] ss:$0 sm:$0xff] }
 0x307   :  { %1582 = vmatmul.mubr.msk.bf16.vlgmr.msra.gmra.mrb[12].mxu1 %vm243_vm2, %v2521_v12  ;;  %v454_v12 = vsub.s32 3, %v2528_v19 }
 0x308   :  { %1702 = vmatprep.mubr.msk.bf16.mxu1 %vm2174_vm0, %v2173_v1  ;;  %v794_v53 = vpop.permute.xlu1 %793  ;;  %1699 = vmatpush3.bf16.msra.mxu1 %v1823_v18 }
 0x309   :  { %v455_v34 = vrot.slane %v2533_v26, %v454_v12  ;;  %1700 = vmatprep.subr.bf16.mxu1 %v2173_v1 }
 0x30c   :  { %v800_v7 = vpop.permute.xlu1 %799 }
 0x30d   :  { %v802_v14 = vmul.f32 %v800_v7, %v742_v4 }
 0x3ca   :  { %v2599_v23 = vpop.f32.mrb[4].mxu1 }
 0x3cb   :  { %v1696_v25 = vpop.f32.mrb[5].mxu1 }
 0x3cc   :  { %v422_v29 = vpop.f32.mrb[6].mxu1 }
 0x3cd   :  { %v1697_v30 = vpop.f32.mrb[7].mxu1  ;;  %v1824_v29 = vld [vmem:[%s2786_s14 + $0x8] sm:$0xff]  }
 0x3ce   :  { %1701 = vmatpush3.bf16.msra.mxu1 %v1824_v29  ;;  %v1831_v29 = vld [vmem:[%s2786_s14 + $0x10] sm:$0xff]  }
 0x3cf   :  { %1714 = vmatprep.subr.bf16.mxu1 %v2173_v1 }
 0x3d2   :  { %v618_v37 = vpop.f32.mrb[8].mxu1 }
 0x3d3   :  { %v619_v39 = vadd.f32 %v618_v37, %v451_v33  ;;  %v620_v40 = vpop.f32.mrb[9].mxu1  ;;  %v1584_v33 = vld [vmem:[#allocation19] ss:$0 sm:$0xff] }
 0x3d4   :  { %v621_v43 = vadd.f32 %v620_v40, %v455_v34  ;;  %v622_v45 = vpop.f32.mrb[10].mxu1 }
 0x3d5   :  { %v766_v49 = vmul.f32 %v764_v22, %v619_v39  ;;  %v623_v50 = vpop.f32.mrb[11].mxu1  ;;  %v1586_v39 = vld [vmem:[%s2787_s15] ss:$0 sm:$0xff] }
 0x3d6   :  { %v772_v52 = vmul.f32 %v770_v41, %v621_v43 }
 0x3d7   :  { %v767_v54 = vadd.f32 %v766_v49, %v2541_v44 }
 0x3d9   :  { %v773_v59 = vadd.f32 %v772_v52, %v767_v54  ;;  %v1826_v54 = vld [vmem:[#allocation22 + $0x8] sm:$0xff]  }
 0x3da   :  { %v700_v61 = vpop.f32.mrb[12].mxu1 }
 0x3db   :  { %v779_v63 = vadd.f32 %v778_v58, %v773_v59  ;;  %v701_v0 = vadd.f32 %v700_v61, %v467_v55  ;;  %v702_v3 = vpop.f32.mrb[13].mxu1  ;;  %v1827_v55 = vld [vmem:[%s2790_s18] sm:$0xff]  }
 0x3dc   :  { %v703_v6 = vadd.f32 %v702_v3, %v471_v57  ;;  %v704_v44 = vpop.f32.mrb[14].mxu1  ;;  %v1590_v61 = vld [vmem:[%s2792_s20] ss:$0 sm:$0xff] }
 0x3dd   :  { %v785_v9 = vadd.f32 %v784_v60, %v779_v63  ;;  %v790_v10 = vmul.f32 %v788_v62, %v701_v0  ;;  %v705_v8 = vpop.f32.mrb[15].mxu1  ;;  %v1591_v63 = vld [vmem:[%s2793_s21] ss:$0 sm:$0xff] }
 0x3de   :  { %v796_v11 = vmul.f32 %v794_v53, %v703_v6  ;;  %v1825_v53 = vld [vmem:[#allocation22] sm:$0xff]   ;;  %v1830_v6 = vld [vmem:[%s2790_s18 + $0x18] sm:$0xff]   ;;  %v1592_v44 = vld [vmem:[%s2789_s17] ss:$0 sm:$0xff] }
 0x3df   :  { %v791_v26 = vadd.f32 %v790_v10, %v785_v9  ;;  %1707 = vmatpush3.bf16.msra.mxu0 %v1825_v53 }
 0x3e0   :  { %1708 = vmatprep.subr.bf16.mxu0 %v2173_v1 }
 0x3e1   :  { %v797_v16 = vadd.f32 %v796_v11, %v791_v26 }
 0x3e3   :  { %v803_v20 = vadd.f32 %v802_v14, %v797_v16  ;;  %1709 = vmatpush3.bf16.msra.mxu0 %v1826_v54  ;;  %v1596_v14 = vld [vmem:[%s2791_s19] ss:$0 sm:$0xff] }
 0x3e4   :  { %1726 = vmatprep.subr.bf16.mxu0 %v2173_v1  ;;  %v1833_v54 = vld [vmem:[#allocation22 + $0x10] sm:$0xff]  }
 0x3e5   :  { %v809_v22 = vadd.f32 %v808_v21, %v803_v20 }
 0x3e7   :  { %v813_v17 = vsel %vm812_vm4, %v809_v22, 0.0 }
 0x3e8   :  { %814 = vadd.xlane.f32.xlu1 %v813_v17 }
 0x475   :  { %v815_v19 = vpop.xlane.xlu1 %814 }
 0x476   :  { %v817_v27 = vmul.f32 0.03125, %v815_v19 }
 0x478   :  { %v818_v2 = vsub.f32 %v809_v22, %v817_v27 }
 0x47a   :  { %v819_v25 = vmul.f32 %v818_v2, %v818_v2 }
 0x47c   :  { %v820_v28 = vsel %vm812_vm4, %v819_v25, 0.0 }
 0x47d   :  { %821 = vadd.xlane.f32.xlu0 %v820_v28 }
 0x50a   :  { %v822_v12 = vpop.xlane.xlu0 %821 }
 0x50b   :  { %v823_v30 = vmul.f32 0.03125, %v822_v12  ;;  %v1832_v12 = vld [vmem:[%s2786_s14 + $0x18] sm:$0xff]  }
 0x50d   :  { %v824_v31 = vadd.f32 1e-05, %v823_v30 }
 0x50f   :  { %1843 = vrsqrt.f32 %v824_v31 }
 0x519   :  { %v1844_v32 = vpop.eup %1843 }
 0x51a   :  { %v826_v34 = vmul.f32 %v1844_v32, %v818_v2 }
 0x51c   :  { %v833_v36 = vmul.f32 %v1584_v33, %v826_v34  ;;  %v1602_v34 = vld [vmem:[%s2794_s22] ss:$0 sm:$0xff] }
 0x51e   :  { %v840_v37 = vadd.f32 %v1585_v35, %v833_v36  ;;  %v1603_v36 = vld [vmem:[%s2795_s23] ss:$0 sm:$0xff] }
 0x520   :  { %v845_v38 = vpack.c.bf16 %v840_v37, %v840_v37 }
 0x522   :  { %1703 = vmatmul.mubr.msk.bf16.vlgmr.msra.gmra.mrb[16].mxu1 %vm812_vm4, %v845_v38 }
 0x523   :  { %1722 = vmatprep.mubr.msk.bf16.mxu1 %vm2174_vm0, %v2173_v1  ;;  %1715 = vmatpush3.bf16.msra.mxu1 %v1827_v55  ;;  %v1834_v55 = vld [vmem:[#allocation22 + $0x18] sm:$0xff]  }
 0x524   :  { %1716 = vmatprep.subr.bf16.mxu1 %v2173_v1 }
 0x527   :  { %1717 = vmatpush3.bf16.msra.mxu1 %v1828_v56  ;;  %v1835_v56 = vld [vmem:[%s2790_s18 + $0x20] sm:$0xff]  }
 0x528   :  { %1718 = vmatprep.subr.bf16.mxu1 %v2173_v1 }
 0x52b   :  { %1719 = vmatpush3.bf16.msra.mxu1 %v1829_v5 }
 0x52c   :  { %1720 = vmatprep.subr.bf16.mxu1 %v2173_v1 }
 0x52f   :  { %1721 = vmatpush3.bf16.msra.mxu1 %v1830_v6  ;;  %v1837_v6 = vld [vmem:[%s2790_s18 + $0x30] sm:$0xff]  }
 0x530   :  { %1742 = vmatprep.subr.bf16.mxu1 %v2173_v1 }
 0x5f5   :  { %v902_v40 = vpop.f32.mrb[16].mxu1 }
 0x5f6   :  { %v903_v41 = vadd.f32 %v1586_v39, %v902_v40  ;;  %v1704_v42 = vpop.f32.mrb[17].mxu1  ;;  %v1609_v40 = vld [vmem:[%s2787_s15 + $0x1] ss:$0 sm:$0xff] }
 0x5f7   :  { %v905_v43 = vpop.f32.mrb[18].mxu1 }
 0x5f8   :  { %v1705_v45 = vpop.f32.mrb[19].mxu1  ;;  %v908_v46 = vadd.f32 %v903_v41, %v840_v37 }
 0x5fa   :  { %v911_v47 = vsel %vm812_vm4, %v908_v46, 0.0 }
 0x5fb   :  { %912 = vadd.xlane.f32.xlu1 %v911_v47 }
 0x688   :  { %v913_v48 = vpop.xlane.xlu1 %912 }
 0x689   :  { %v914_v49 = vmul.f32 0.03125, %v913_v48 }
 0x68b   :  { %v915_v50 = vsub.f32 %v908_v46, %v914_v49 }
 0x68d   :  { %v916_v51 = vmul.f32 %v915_v50, %v915_v50 }
 0x68f   :  { %v917_v52 = vsel %vm812_vm4, %v916_v51, 0.0 }
 0x690   :  { %918 = vadd.xlane.f32.xlu0 %v917_v52 }
 0x71d   :  { %v919_v57 = vpop.xlane.xlu0 %918 }
 0x71e   :  { %v920_v58 = vmul.f32 0.03125, %v919_v57  ;;  %v1836_v57 = vld [vmem:[%s2790_s18 + $0x28] sm:$0xff]  }
 0x720   :  { %v921_v59 = vadd.f32 1e-05, %v920_v58 }
 0x722   :  { %1845 = vrsqrt.f32 %v921_v59 }
 0x72c   :  { %v1846_v60 = vpop.eup %1845 }
 0x72d   :  { %v923_v62 = vmul.f32 %v1846_v60, %v915_v50 }
 0x72f   :  { %v930_v0 = vmul.f32 %v1590_v61, %v923_v62  ;;  %v1615_v62 = vld [vmem:[%s2792_s20 + $0x1] ss:$0 sm:$0xff] }
 0x731   :  { %v937_v3 = vadd.f32 %v1591_v63, %v930_v0  ;;  %v1616_v0 = vld [vmem:[%s2793_s21 + $0x1] ss:$0 sm:$0xff] }
 0x733   :  { %v942_v4 = vpack.c.bf16 %v937_v3, %v937_v3 }
 0x735   :  { %1711 = vmatmul.mubr.msk.bf16.vlgmr.msra.gmra.mrb[16].mxu0 %vm812_vm4, %v942_v4 }
 0x736   :  { %1730 = vmatprep.mubr.msk.bf16.mxu0 %vm2174_vm0, %v2173_v1  ;;  %1727 = vmatpush3.bf16.msra.mxu0 %v1831_v29 }
 0x737   :  { %1728 = vmatprep.subr.bf16.mxu0 %v2173_v1 }
 0x73a   :  { %1729 = vmatpush3.bf16.msra.mxu0 %v1832_v12  ;;  %v1839_v12 = vld [vmem:[%s2796_s24] sm:$0xff]  }
 0x73b   :  { %1734 = vmatprep.subr.bf16.mxu0 %v2173_v1 }
 0x808   :  { %v999_v7 = vpop.f32.mrb[16].mxu0 }
 0x809   :  { %v1000_v9 = vadd.f32 %v1592_v44, %v999_v7  ;;  %v1712_v10 = vpop.f32.mrb[17].mxu0  ;;  %v1838_v44 = vld [vmem:[%s2790_s18 + $0x38] sm:$0xff]   ;;  %v1618_v7 = vld [vmem:[%s2789_s17 + $0x1] ss:$0 sm:$0xff] }
 0x80a   :  { %v1002_v8 = vpop.f32.mrb[18].mxu0 }
 0x80b   :  { %v1005_v11 = vmax.f32 %v1000_v9, 0.0  ;;  %v1713_v26 = vpop.f32.mrb[19].mxu0 }
 0x80d   :  { %v1014_v13 = vpack.c.bf16 %v1005_v11, %v1005_v11 }
 0x80f   :  { %1723 = vmatmul.mubr.msk.bf16.vlgmr.msra.gmra.mrb[20].mxu1 %vm1046_vm5, %v1014_v13 }
 0x810   :  { %1750 = vmatprep.mubr.msk.bf16.mxu1 %vm2174_vm0, %v2173_v1  ;;  %1743 = vmatpush3.bf16.msra.mxu1 %v1835_v56 }
 0x811   :  { %1744 = vmatprep.subr.bf16.mxu1 %v2173_v1 }
 0x814   :  { %1745 = vmatpush3.bf16.msra.mxu1 %v1836_v57 }
 0x815   :  { %1746 = vmatprep.subr.bf16.mxu1 %v2173_v1 }
 0x818   :  { %1747 = vmatpush3.bf16.msra.mxu1 %v1837_v6 }
 0x819   :  { %1748 = vmatprep.subr.bf16.mxu1 %v2173_v1 }
 0x81c   :  { %1749 = vmatpush3.bf16.msra.mxu1 %v1838_v44 }
 0x8e2   :  { %v1084_v15 = vpop.f32.mrb[20].mxu1 }
 0x8e3   :  { %v1085_v16 = vadd.f32 %v1596_v14, %v1084_v15  ;;  %v1724_v20 = vpop.f32.mrb[21].mxu1  ;;  %v1631_v15 = vld [vmem:[%s2791_s19 + $0x1] ss:$0 sm:$0xff] }
 0x8e4   :  { %v1087_v21 = vpop.f32.mrb[22].mxu1 }
 0x8e5   :  { %v1725_v22 = vpop.f32.mrb[23].mxu1  ;;  %v1090_v17 = vadd.f32 %v1085_v16, %v937_v3 }
 0x8e7   :  { %v1093_v19 = vsel %vm812_vm4, %v1090_v17, 0.0 }
 0x8e8   :  { %1094 = vadd.xlane.f32.xlu1 %v1093_v19 }
 0x975   :  { %v1095_v27 = vpop.xlane.xlu1 %1094 }
 0x976   :  { %v1096_v2 = vmul.f32 0.03125, %v1095_v27 }
 0x978   :  { %v1097_v25 = vsub.f32 %v1090_v17, %v1096_v2 }
 0x97a   :  { %v1098_v28 = vmul.f32 %v1097_v25, %v1097_v25 }
 0x97c   :  { %v1099_v18 = vsel %vm812_vm4, %v1098_v28, 0.0 }
 0x97d   :  { %1100 = vadd.xlane.f32.xlu0 %v1099_v18 }
 0xa0a   :  { %v1101_v30 = vpop.xlane.xlu0 %1100 }
 0xa0b   :  { %v1102_v31 = vmul.f32 0.03125, %v1101_v30  ;;  %v1840_v30 = vld [vmem:[%s2796_s24 + $0x8] sm:$0xff]  }
 0xa0d   :  { %v1103_v32 = vadd.f32 1e-05, %v1102_v31 }
 0xa0f   :  { %1847 = vrsqrt.f32 %v1103_v32 }
 0xa19   :  { %v1848_v33 = vpop.eup %1847 }
 0xa1a   :  { %v1105_v35 = vmul.f32 %v1848_v33, %v1097_v25 }
 0xa1c   :  { %v1112_v37 = vmul.f32 %v1602_v34, %v1105_v35  ;;  %v1639_v35 = vld [vmem:[%s2794_s22 + $0x1] ss:$0 sm:$0xff] }
 0xa1e   :  { %v1119_v38 = vadd.f32 %v1603_v36, %v1112_v37  ;;  %v1566_v37 = vld [vmem:[%s2840_s9] ss:$0 sm:$0xff] }
 0xa20   :  { %v1125_v39 = vpack.c.bf16 %v1119_v38, %v1119_v38 }
 0xa22   :  { %1731 = vmatmul.mubr.msk.bf16.vlgmr.msra.gmra.mrb[20].mxu0 %vm812_vm4, %v1125_v39 }
 0xa23   :  { %1738 = vmatprep.mubr.msk.bf16.mxu0 %vm2174_vm0, %v2173_v1  ;;  %1735 = vmatpush3.bf16.msra.mxu0 %v1833_v54 }
 0xa24   :  { %1736 = vmatprep.subr.bf16.mxu0 %v2173_v1 }
 0xa27   :  { %1737 = vmatpush3.bf16.msra.mxu0 %v1834_v55 }
 0xa28   :  { %1754 = vmatprep.subr.bf16.mxu0 %v2173_v1 }
 0xaf5   :  { %v1183_v41 = vpop.f32.mrb[20].mxu0 }
 0xaf6   :  { %v1184_v42 = vadd.f32 %v1609_v40, %v1183_v41  ;;  %v1732_v43 = vpop.f32.mrb[21].mxu0  ;;  %v420_v40 = vadd.f32 %v1566_v37, %v2599_v23 }
 0xaf7   :  { %v1186_v45 = vpop.f32.mrb[22].mxu0 }
 0xaf8   :  { %v1733_v46 = vpop.f32.mrb[23].mxu0  ;;  %v1189_v47 = vadd.f32 %v1184_v42, %v1119_v38  ;;  %v1640_v38 = vld [vmem:[%s2795_s23 + $0x1] ss:$0 sm:$0xff]  ;;  %v1479_v45 = vld [vmem:[#allocation3] sm:$0x1] }
 0xaf9   :  { %v1641_v46 = vld [vmem:[%s2797_s25] ss:$0 sm:$0xff]  ;;  %s2185_s25 = smov [#allocation24]  }
 0xafa   :  { %v1194_v48 = vsel %vm812_vm4, %v1189_v47, 0.0  ;;  %s1549_s8 = sshll.u32 %s2185_s25, 4  ;;  %s1550_s8 = int_to_ptr.vmem [resolvable:$true] %s1549_s8 }
 0xafb   :  { %1195 = vadd.xlane.f32.xlu1 %v1194_v48  ;;  %s2121_s28 = scalar_lea.vmem %s1550_s8, 16  ;;  %s2125_s13 = scalar_lea.vmem %s1550_s8, 32 }
 0xafc   :  { %p2122_p12 = scmp.ne.s32.totalorder %s1550_s8, %s2121_s28  ;;  %p2126_p13 = scmp.lt.s32.totalorder %s1550_s8, %s1550_s8 }
 0xafd   :  { %p2127_p0 = scmp.lt.s32.totalorder %s2125_s13, %s2121_s28 }
 0xaff   :  { %p2128_p1 = por %p2127_p0, %p2126_p13 }
 0xb01   :  { %p2129_p2 = pnand %p2128_p1, %p2122_p12 }
 0xb88   :  { %v1196_v49 = vpop.xlane.xlu1 %1195 }
 0xb89   :  { %v1197_v50 = vmul.f32 0.03125, %v1196_v49 }
 0xb8b   :  { %v1198_v51 = vsub.f32 %v1189_v47, %v1197_v50 }
 0xb8d   :  { %v1199_v52 = vmul.f32 %v1198_v51, %v1198_v51 }
 0xb8f   :  { %v1200_v53 = vsel %vm812_vm4, %v1199_v52, 0.0 }
 0xb90   :  { %1201 = vadd.xlane.f32.xlu0 %v1200_v53 }
 0xc1d   :  { %v1202_v58 = vpop.xlane.xlu0 %1201 }
 0xc1e   :  { %v1203_v59 = vmul.f32 0.03125, %v1202_v58 }
 0xc20   :  { %v1204_v60 = vadd.f32 1e-05, %v1203_v59 }
 0xc22   :  { %1849 = vrsqrt.f32 %v1204_v60 }
 0xc2c   :  { %v1850_v61 = vpop.eup %1849 }
 0xc2d   :  { %v1206_v63 = vmul.f32 %v1850_v61, %v1198_v51 }
 0xc2f   :  { %v1213_v3 = vmul.f32 %v1615_v62, %v1206_v63 }
 0xc31   :  { %v1220_v4 = vadd.f32 %v1616_v0, %v1213_v3 }
 0xc33   :  { %v1226_v5 = vpack.c.bf16 %v1220_v4, %v1220_v4 }
 0xc35   :  { %1739 = vmatmul.mubr.msk.bf16.vlgmr.msra.gmra.mrb[24].mxu0 %vm812_vm4, %v1226_v5 }
 0xc36   :  { %1758 = vmatprep.mubr.msk.bf16.mxu0 %vm2174_vm0, %v2173_v1  ;;  %1755 = vmatpush3.bf16.msra.mxu0 %v1839_v12 }
 0xc37   :  { %1756 = vmatprep.subr.bf16.mxu0 %v2173_v1 }
 0xc3a   :  { %1757 = vmatpush3.bf16.msra.mxu0 %v1840_v30 }
 0xc3b   :  { %1762 = vmatprep.subr.bf16.mxu0 %v2173_v1 }
 0xd08   :  { %v1284_v9 = vpop.f32.mrb[24].mxu0 }
 0xd09   :  { %v1285_v10 = vadd.f32 %v1618_v7, %v1284_v9  ;;  %v1740_v8 = vpop.f32.mrb[25].mxu0 }
 0xd0a   :  { %v1287_v11 = vpop.f32.mrb[26].mxu0 }
 0xd0b   :  { %v1290_v26 = vmax.f32 %v1285_v10, 0.0  ;;  %v1741_v13 = vpop.f32.mrb[27].mxu0 }
 0xd0d   :  { %v1300_v14 = vpack.c.bf16 %v1290_v26, %v1290_v26 }
 0xd0f   :  { %1751 = vmatmul.mubr.msk.bf16.vlgmr.msra.gmra.mrb[24].mxu1 %vm1046_vm5, %v1300_v14 }
 0xde2   :  { %v1370_v16 = vpop.f32.mrb[24].mxu1 }
 0xde3   :  { %v1371_v20 = vadd.f32 %v1631_v15, %v1370_v16  ;;  %v1752_v21 = vpop.f32.mrb[25].mxu1 }
 0xde4   :  { %v1373_v22 = vpop.f32.mrb[26].mxu1 }
 0xde5   :  { %v1753_v17 = vpop.f32.mrb[27].mxu1  ;;  %v1376_v19 = vadd.f32 %v1371_v20, %v1220_v4 }
 0xde7   :  { %v1381_v27 = vsel %vm812_vm4, %v1376_v19, 0.0 }
 0xde8   :  { %1382 = vadd.xlane.f32.xlu1 %v1381_v27 }
 0xdf9   :  { %1482 = vperm.xlu1 %1805, %v1479_v45  }
 0xe75   :  { %v1383_v2 = vpop.xlane.xlu1 %1382 }
 0xe76   :  { %v1384_v25 = vmul.f32 0.03125, %v1383_v2 }
 0xe78   :  { %v1385_v28 = vsub.f32 %v1376_v19, %v1384_v25 }
 0xe79   :  { %v1483_v54 = vpop.permute.xlu1 %1482 }
 0xe7a   :  { %v1386_v18 = vmul.f32 %v1385_v28, %v1385_v28  ;;  %v1488_v55 = vrot.slane %v1483_v54, %v2531_v24 }
 0xe7c   :  { %v1387_v29 = vsel %vm812_vm4, %v1386_v18, 0.0 }
 0xe7d   :  { %1388 = vadd.xlane.f32.xlu0 %v1387_v29 }
 0xf0a   :  { %v1389_v31 = vpop.xlane.xlu0 %1388 }
 0xf0b   :  { %v1390_v32 = vmul.f32 0.03125, %v1389_v31 }
 0xf0d   :  { %v1391_v33 = vadd.f32 1e-05, %v1390_v32 }
 0xf0f   :  { %1851 = vrsqrt.f32 %v1391_v33 }
 0xf19   :  { %v1852_v34 = vpop.eup %1851 }
 0xf1a   :  { %v1393_v36 = vmul.f32 %v1852_v34, %v1385_v28 }
 0xf1c   :  { %v1400_v39 = vmul.f32 %v1639_v35, %v1393_v36 }
 0xf1e   :  { %v1407_v41 = vadd.f32 %v1640_v38, %v1400_v39 }
 0xf20   :  { %v1408_v42 = vadd.f32 %v1407_v41, %v420_v40 }
 0xf22   :  { %v1413_v43 = vpack.c.bf16 %v1408_v42, %v1408_v42 }
 0xf24   :  { %1759 = vmatmul.mubr.msk.bf16.vlgmr.msra.gmra.mrb[28].mxu0 %vm812_vm4, %v1413_v43 }
 0xf25   :  { %1764 = vmatprep.mubr.msk.bf16.mxu0 %vm2174_vm0, %v2173_v1  ;;  %v1477_v1 = vld [vmem:[%s2841_s27] sm:$0x1] }
 0xff7   :  { %v1470_v47 = vpop.f32.mrb[28].mxu0 }
 0xff8   :  { %v1471_v48 = vadd.f32 %v1641_v46, %v1470_v47  ;;  %v1760_v49 = vpop.f32.mrb[29].mxu0 }
 0xff9   :  { %v1473_v50 = vpop.f32.mrb[30].mxu0 }
 0xffa   :  { %v1476_v51 = vmax.f32 %v1471_v48, 0.0  ;;  %v1761_v23 = vpop.f32.mrb[31].mxu0 }
 0xffc   :  { %v1478_v52 = vpack.c.bf16 %v1476_v51, %v1476_v51 }
 0xffe   :  { %v1493_v53 = vsel %vm812_vm4, %v1478_v52, 0 }
 0xfff   :  { %1763 = vmatpush3.bf16.xpose.msra.mxu0 %v1493_v53 }
0x1006   :  { %1765 = vmatmul.mubr.msk.bf16.vlgmr.msra.gmra.mrb[32].mxu0 %vm812_vm4, %v1477_v1 }
0x10d9   :  { %v1529_v56 = vpop.f32.mrb[32].mxu0 }
0x10da   :  { %v1530_v57 = vadd.f32 %v1529_v56, %v1488_v55  ;;  %v1766_v58 = vpop.f32.mrb[33].mxu0 }
0x10db   :  { %v1532_v59 = vpop.f32.mrb[34].mxu0 }
0x10dc   :  { %v1646_v60 = vmul.f32 -1.442695, %v1530_v57  ;;  %v1767_v61 = vpop.f32.mrb[35].mxu0 }
0x10de   :  { %1853 = vpow2.f32 %v1646_v60 }
0x10e8   :  { %v1854_v62 = vpop.eup %1853 }
0x10e9   :  { %v1538_v63 = vadd.f32 1.0, %v1854_v62 }
0x10eb   :  { %1855 = vrcp.f32 %v1538_v63 }
0x10f5   :  { %v1856_v0 = vpop.eup %1855 }
0x10f6   :  { %1542 = vst.msk [vmem:[#allocation24] sm:$0x1] %vm1541_vm6, %v1856_v0 }
0x10f7   :  { %2132 = shalt.err (!%p2129_p2)
}
0x10f8   :  { %s2842_s1 = sld [smem:[#allocation47_spill]] }
0x10fe   :  { %s2133_s4 = scalar_lea.hbm %s2842_s1, 16 }
0x10ff   :  { %p2134_p3 = scmp.ne.s32.totalorder %s2842_s1, %s2133_s4  ;;  %p2137_p4 = scmp.lt.u32.totalorder %s2133_s4, %s2842_s1 }
0x1101   :  { %p2139_p5 = pnand %p2137_p4, %p2134_p3 }
0x1103   :  { %2142 = shalt.err (!%p2139_p5)
}
0x1104   :  { %1552 = dma.vmem_to_hbm [thread:$0]  %s1550_s8, 16, %s2842_s1, [#allocation6]  }
0x1105   :  { %2157 = dma.done.wait [#allocation6], 16  }
0x1106   :  { %2158 = vsyncadd [#allocation6], 4294967280 }
0x1107   :  { %1556 = vsyncpa [#allocation5], 1 }
0x1108   :  { %1557 = vsyncpa [#allocation8], 1 }
0x1109   :  { %1558 = vsyncpa [#allocation11], 1 }
0x110a   :  { %1559 = vsyncpa [#allocation14], 1 }
0x110b   :  { %1560 = vsyncpa [#allocation17], 1 }
0x110c   :  { %1561 = vsyncpa [#allocation20], 1 }
0x110d   :  { %1562 = vsyncpa [#allocation23], 1 }
0x110e   :  { %1563 = vsyncpa [#allocation6], 1 }

</bundles_post_ra>
